<compile_context>
chip_gen: v5e
topology: v5e:2x2
jax: 0.10.0
libtpu: 0.0.40
codegen_flags: <defaults>
</compile_context>

<pallas_src>
import functools

import jax
import jax.numpy as jnp
from jax.experimental import pallas as pl
from jax.experimental.pallas import tpu as pltpu


# ----------------------------------------------------------------------------
# helpers
# ----------------------------------------------------------------------------
def _log_softmax(x):
    m = jnp.max(x, axis=-1, keepdims=True)
    s = x - m
    return s - jnp.log(jnp.sum(jnp.exp(s), axis=-1, keepdims=True))


def _round_up(x, m):
    return (x + m - 1) // m * m


def _pick_tile(desired, n_pad):
    """Largest multiple of 128 <= desired that divides n_pad (n_pad % 128 == 0)."""
    t = max(128, min(desired, n_pad))
    t = (t // 128) * 128
    while n_pad % t:
        t -= 128
    return t


# ----------------------------------------------------------------------------
# Fused SAGE layer 1:  h = relu( (1/deg) * (A_bin @ (X @ W_l)) + X@W_r + b )
# grid = (row blocks [parallel], K-reduction blocks [arbitrary])
# ----------------------------------------------------------------------------
def sage_layer1_kernel(a_ref, xk_ref, xi_ref, wl_ref, wr_ref, b_ref, dinv_ref,
                       h_ref, acc_ref):
    @pl.when(pl.program_id(1) == 0)
    def _():
        acc_ref[...] = jnp.zeros_like(acc_ref)

    # per-node linear on the k block, recomputed per row block (free MXU work
    # under the HBM-bound A stream; avoids an HBM round trip of Z)
    zl = jnp.dot(xk_ref[...], wl_ref[...], preferred_element_type=jnp.float32)
    # 0/1 adjacency stored as int8 in HBM (half the dominant stream's bytes);
    # exact when widened to bf16.
    a = a_ref[...].astype(jnp.float32).astype(jnp.bfloat16)
    acc_ref[...] += jnp.dot(a, zl.astype(jnp.bfloat16),
                            preferred_element_type=jnp.float32)

    @pl.when(pl.program_id(1) == pl.num_programs(1) - 1)
    def _():
        self_term = jnp.dot(xi_ref[...], wr_ref[...],
                            preferred_element_type=jnp.float32)
        out = acc_ref[...] * dinv_ref[...] + self_term + b_ref[...]
        out = jnp.maximum(out, 0.0)                       # ReLU
        h_ref[...] = out.astype(h_ref.dtype)              # emitted as bf16


def _sage_layer1(a_i8, x_bf16, w_l, w_r, b, deg_inv, *, tm, tk):
    n_pad, nfeat = x_bf16.shape
    nhid = w_l.shape[1]
    grid = (n_pad // tm, n_pad // tk)
    return pl.pallas_call(
        sage_layer1_kernel,
        out_shape=jax.ShapeDtypeStruct((n_pad, nhid), jnp.bfloat16),
        grid=grid,
        in_specs=[
            pl.BlockSpec((tm, tk), lambda i, k: (i, k)),        # A_bin (int8)
            pl.BlockSpec((tk, nfeat), lambda i, k: (k, 0)),     # X k-block
            pl.BlockSpec((tm, nfeat), lambda i, k: (i, 0)),     # X i-block
            pl.BlockSpec((nfeat, nhid), lambda i, k: (0, 0)),   # W_l (resident)
            pl.BlockSpec((nfeat, nhid), lambda i, k: (0, 0)),   # W_r (resident)
            pl.BlockSpec((1, nhid), lambda i, k: (0, 0)),       # bias
            pl.BlockSpec((tm, 1), lambda i, k: (i, 0)),         # 1/deg
        ],
        out_specs=pl.BlockSpec((tm, nhid), lambda i, k: (i, 0)),
        scratch_shapes=[pltpu.VMEM((tm, nhid), jnp.float32)],
        compiler_params=pltpu.CompilerParams(
            dimension_semantics=("parallel", "arbitrary")),
    )(a_i8, x_bf16, x_bf16, w_l, w_r, b, deg_inv)


# ----------------------------------------------------------------------------
# Fused SAGE layer 2 + fakereal head + both log_softmax outputs.
# ----------------------------------------------------------------------------
def sage_layer2_kernel(a_ref, hk_ref, hi_ref, wl_ref, wr_ref, b_ref, dinv_ref,
                       wfr_ref, bfr_ref,
                       logits_ref, xclass_ref, fr_ref, xfr_ref, acc_ref):
    @pl.when(pl.program_id(1) == 0)
    def _():
        acc_ref[...] = jnp.zeros_like(acc_ref)

    zl = jnp.dot(hk_ref[...], wl_ref[...], preferred_element_type=jnp.float32)
    a = a_ref[...].astype(jnp.float32).astype(jnp.bfloat16)
    acc_ref[...] += jnp.dot(a, zl.astype(jnp.bfloat16),
                            preferred_element_type=jnp.float32)

    @pl.when(pl.program_id(1) == pl.num_programs(1) - 1)
    def _():
        h_i = hi_ref[...]
        self_term = jnp.dot(h_i, wr_ref[...], preferred_element_type=jnp.float32)
        logits = acc_ref[...] * dinv_ref[...] + self_term + b_ref[...]
        logits_ref[...] = logits.astype(logits_ref.dtype)
        xclass_ref[...] = _log_softmax(logits).astype(xclass_ref.dtype)

        fr = jnp.dot(h_i, wfr_ref[...],
                     preferred_element_type=jnp.float32) + bfr_ref[...]
        fr_ref[...] = fr.astype(fr_ref.dtype)
        xfr_ref[...] = _log_softmax(fr).astype(xfr_ref.dtype)


def _sage_layer2(a_i8, h_bf16, w_l, w_r, b, deg_inv, w_fr, b_fr, *, tm, tk):
    n_pad, nhid = h_bf16.shape
    nclass = w_l.shape[1]
    grid = (n_pad // tm, n_pad // tk)
    row_spec = lambda f: pl.BlockSpec((tm, f), lambda i, k: (i, 0))
    return pl.pallas_call(
        sage_layer2_kernel,
        out_shape=(jax.ShapeDtypeStruct((n_pad, nclass), jnp.float32),   # logits
                   jax.ShapeDtypeStruct((n_pad, nclass), jnp.float32),   # x_class
                   jax.ShapeDtypeStruct((n_pad, 2), jnp.float32),        # fakeorreal
                   jax.ShapeDtypeStruct((n_pad, 2), jnp.float32)),       # x_fakereal
        grid=grid,
        in_specs=[
            pl.BlockSpec((tm, tk), lambda i, k: (i, k)),        # A_bin (int8)
            pl.BlockSpec((tk, nhid), lambda i, k: (k, 0)),      # h k-block
            pl.BlockSpec((tm, nhid), lambda i, k: (i, 0)),      # h i-block
            pl.BlockSpec((nhid, nclass), lambda i, k: (0, 0)),  # W_l
            pl.BlockSpec((nhid, nclass), lambda i, k: (0, 0)),  # W_r
            pl.BlockSpec((1, nclass), lambda i, k: (0, 0)),     # bias
            pl.BlockSpec((tm, 1), lambda i, k: (i, 0)),         # 1/deg
            pl.BlockSpec((nhid, 2), lambda i, k: (0, 0)),       # W_fakereal
            pl.BlockSpec((1, 2), lambda i, k: (0, 0)),          # b_fakereal
        ],
        out_specs=(row_spec(nclass), row_spec(nclass), row_spec(2), row_spec(2)),
        scratch_shapes=[pltpu.VMEM((tm, nclass), jnp.float32)],
        compiler_params=pltpu.CompilerParams(
            dimension_semantics=("parallel", "arbitrary")),
    )(a_i8, h_bf16, h_bf16, w_l, w_r, b, deg_inv, w_fr, b_fr)


# ----------------------------------------------------------------------------
# StandSAGEClassifier.forward (eval mode)
# returns (logits, fakeorreal, x_class, x_fakereal)
#   adj: dense 0/1 adjacency, adj[i, j] = 1 for edge j -> i (rows = targets)
# ----------------------------------------------------------------------------
def stand_sage_forward(x, adj, params, *, tm=512, tk=512):
    n, nfeat = x.shape
    nhid = params["w1_l"].shape[1]
    nclass = params["w2_l"].shape[1]

    # pad N to a multiple of 128 so (8,128)-aligned tiles always divide it;
    # padded rows have zero features / zero adjacency -> sliced off at the end.
    n_pad = max(_round_up(n, 128), 128)
    if n_pad != n:
        x = jnp.pad(x, ((0, n_pad - n), (0, 0)))
        adj = jnp.pad(adj, ((0, n_pad - n), (0, n_pad - n)))

    tm = _pick_tile(tm, n_pad)
    tk = _pick_tile(tk, n_pad)
    if n_pad // tm < 2 and n_pad >= 256:
        tm = _pick_tile(n_pad // 2, n_pad)   # v7x megacore: keep >= 2 row blocks

    adj_f = adj.astype(jnp.float32)
    a_i8 = adj_f.astype(jnp.int8)                              # exact 0/1
    deg = jnp.sum(adj_f, axis=1, keepdims=True)
    deg_inv = 1.0 / jnp.maximum(deg, 1.0)                      # isolated rows -> 0 agg

    x_bf16 = x.astype(jnp.bfloat16)

    # ---- conv1 + ReLU (fused) ----------------------------------------------
    w1_l = params["w1_l"].astype(jnp.bfloat16)
    w1_r = params["w1_r"].astype(jnp.bfloat16)
    b1 = params["b1_l"].reshape(1, nhid).astype(jnp.float32)
    h = _sage_layer1(a_i8, x_bf16, w1_l, w1_r, b1, deg_inv, tm=tm, tk=tk)

    # TODO(synk): F.dropout is a no-op in eval mode; training-mode RNG masking
    # (pltpu.prng_*) is not implemented here.

    # ---- conv2 + fakereal head + both log_softmax (fused) -------------------
    w2_l = params["w2_l"].astype(jnp.bfloat16)
    w2_r = params["w2_r"].astype(jnp.bfloat16)
    b2 = params["b2_l"].reshape(1, nclass).astype(jnp.float32)
    w_fr = params["w_fr"].astype(jnp.bfloat16)
    b_fr = params["b_fr"].reshape(1, 2).astype(jnp.float32)

    logits, x_class, fakeorreal, x_fakereal = _sage_layer2(
        a_i8, h, w2_l, w2_r, b2, deg_inv, w_fr, b_fr, tm=tm, tk=tk)

    return (logits[:n], fakeorreal[:n], x_class[:n], x_fakereal[:n])


# ----------------------------------------------------------------------------
# params / inputs / pure-JAX reference
# ----------------------------------------------------------------------------
def init_params(key, nfeat, nhid, nclass):
    """Mimic torch.nn.Linear default init; fakereal weight ~ N(0, 0.05)."""
    ks = jax.random.split(key, 8)

    def lin_w(k, fan_in, fan_out):
        bound = fan_in ** -0.5
        return jax.random.uniform(k, (fan_in, fan_out), jnp.float32, -bound, bound)

    def lin_b(k, fan_in, fan_out):
        bound = fan_in ** -0.5
        return jax.random.uniform(k, (fan_out,), jnp.float32, -bound, bound)

    return {
        # conv1: lin_l (nfeat->nhid, bias) + temp_weight (nfeat->nhid, no bias)
        "w1_l": lin_w(ks[0], nfeat, nhid),
        "b1_l": lin_b(ks[1], nfeat, nhid),
        "w1_r": lin_w(ks[2], nfeat, nhid),
        # conv2: lin_l (nhid->nclass, bias) + temp_weight (nhid->nclass, no bias)
        "w2_l": lin_w(ks[3], nhid, nclass),
        "b2_l": lin_b(ks[4], nhid, nclass),
        "w2_r": lin_w(ks[5], nhid, nclass),
        # fakereal head (nhid->2): weight re-init N(0,0.05), default Linear bias
        "w_fr": 0.05 * jax.random.normal(ks[6], (nhid, 2), jnp.float32),
        "b_fr": lin_b(ks[7], nhid, 2),
        # TODO(synk): self.classifier (Linear nhid->nclass) exists in the module
        # but is never used in forward(); omitted.
    }


def build_binary_adjacency(key, n, edge_prob=0.15):
    """Random directed graph -> dense 0/1 adjacency, no self loops."""
    adj = (jax.random.uniform(key, (n, n)) < edge_prob).astype(jnp.float32)
    return adj * (1.0 - jnp.eye(n, dtype=jnp.float32))


def reference_forward(x, a_mean, params):
    h = a_mean @ x @ params["w1_l"] + params["b1_l"] + x @ params["w1_r"]
    h = jnp.maximum(h, 0.0)
    logits = a_mean @ h @ params["w2_l"] + params["b2_l"] + h @ params["w2_r"]
    fakeorreal = h @ params["w_fr"] + params["b_fr"]
    x_class = jax.nn.log_softmax(logits, axis=1)
    x_fakereal = jax.nn.log_softmax(fakeorreal, axis=1)
    return logits, fakeorreal, x_class, x_fakereal


if __name__ == "__main__":
    N, NFEAT, NHID, NCLASS = 256, 64, 32, 8

    key = jax.random.PRNGKey(0)
    k_x, k_adj, k_p = jax.random.split(key, 3)

    x = jax.random.normal(k_x, (N, NFEAT), jnp.float32)
    adj = build_binary_adjacency(k_adj, N)
    params = init_params(k_p, NFEAT, NHID, NCLASS)

    fwd = jax.jit(functools.partial(stand_sage_forward, tm=512, tk=512))
    outs = jax.block_until_ready(fwd(x, adj, params))
    logits, fakeorreal, x_class, x_fakereal = outs

    assert logits.shape == (N, NCLASS)
    assert fakeorreal.shape == (N, 2)
    assert x_class.shape == (N, NCLASS)
    assert x_fakereal.shape == (N, 2)

    # pure-JAX f32 reference (row-normalized adjacency = mean aggregation)
    deg = jnp.sum(adj, axis=1, keepdims=True)
    a_mean = adj / jnp.maximum(deg, 1.0)
    refs = reference_forward(x, a_mean, params)

    names = ("logits", "fakeorreal", "x_class", "x_fakereal")
    for name, got, ref in zip(names, outs, refs):
        assert got.shape == ref.shape, f"{name}: shape mismatch"
        # bf16 feature/weight path vs pure-f32 reference -> loose tolerance
        assert jnp.allclose(got, ref, atol=5e-2, rtol=5e-2), \
            f"{name}: mismatch vs JAX reference"

    print("KERNEL_OK")
</pallas_src>

<mosaic_0001>
module attributes {stable_mosaic.version = 11 : i64} {
  func.func @sage_layer1_kernel(%arg0: i32, %arg1: i32, %arg2: memref<128x256xi8, #tpu.memory_space<vmem>>, %arg3: memref<256x64xbf16, #tpu.memory_space<vmem>>, %arg4: memref<128x64xbf16, #tpu.memory_space<vmem>>, %arg5: memref<64x32xbf16, #tpu.memory_space<vmem>>, %arg6: memref<64x32xbf16, #tpu.memory_space<vmem>>, %arg7: memref<1x32xf32, #tpu.memory_space<vmem>>, %arg8: memref<128x1xf32, #tpu.memory_space<vmem>>, %arg9: memref<128x32xbf16, #tpu.memory_space<vmem>>, %arg10: memref<128x32xf32, #tpu.memory_space<vmem>>) attributes {dimension_semantics = [#tpu.dimension_semantics<parallel>, #tpu.dimension_semantics<arbitrary>], iteration_bounds = array<i64: 2, 1>, scalar_prefetch = 0 : i64, scratch_operands = 1 : i64, tpu.core_type = #tpu.core_type<tc>, window_params = [{transform_indices = @transform_0, window_bounds = array<i64: 128, 256>}, {transform_indices = @transform_1, window_bounds = array<i64: 256, 64>}, {transform_indices = @transform_2, window_bounds = array<i64: 128, 64>}, {pipeline_mode = #tpu.pipeline_mode<synchronous>, transform_indices = @transform_3, window_bounds = array<i64: 64, 32>}, {pipeline_mode = #tpu.pipeline_mode<synchronous>, transform_indices = @transform_4, window_bounds = array<i64: 64, 32>}, {pipeline_mode = #tpu.pipeline_mode<synchronous>, transform_indices = @transform_5, window_bounds = array<i64: 1, 32>}, {transform_indices = @transform_6, window_bounds = array<i64: 128, 1>}, {transform_indices = @transform_7, window_bounds = array<i64: 128, 32>}]} {
    %c0_i32 = arith.constant 0 : i32
    %0 = arith.cmpi eq, %arg1, %c0_i32 : i32
    %1 = arith.extui %0 : i1 to i32
    %c0_i32_0 = arith.constant 0 : i32
    %2 = arith.cmpi ne, %1, %c0_i32_0 : i32
    scf.if %2 {
      %cst_13 = arith.constant 0.000000e+00 : f32
      %17 = vector.broadcast %cst_13 : f32 to vector<128x32xf32>
      %c0_14 = arith.constant 0 : index
      %c0_15 = arith.constant 0 : index
      %18 = vector.load %arg10[%c0_14, %c0_15] : memref<128x32xf32, #tpu.memory_space<vmem>>, vector<128x32xf32>
      tpu.vector_store %arg10[%c0_14, %c0_15], %17 {strides = array<i32>} : memref<128x32xf32, #tpu.memory_space<vmem>>, vector<128x32xf32>,
    } else {
    }
    %c0 = arith.constant 0 : index
    %c0_1 = arith.constant 0 : index
    %3 = vector.load %arg3[%c0, %c0_1] : memref<256x64xbf16, #tpu.memory_space<vmem>>, vector<256x64xbf16>
    %c0_2 = arith.constant 0 : index
    %c0_3 = arith.constant 0 : index
    %4 = vector.load %arg5[%c0_2, %c0_3] : memref<64x32xbf16, #tpu.memory_space<vmem>>, vector<64x32xbf16>
    %cst = arith.constant dense<0.000000e+00> : vector<256x32xf32>
    %5 = tpu.matmul %3, %4, %cst {dimension_numbers = #tpu.dot_dimension_numbers<[1], [0], [0], [1], [0, 0, 1, 1], [], []>} : vector<256x64xbf16>, vector<64x32xbf16>, vector<256x32xf32> -> vector<256x32xf32>
    %c0_4 = arith.constant 0 : index
    %c0_5 = arith.constant 0 : index
    %6 = vector.load %arg2[%c0_4, %c0_5] : memref<128x256xi8, #tpu.memory_space<vmem>>, vector<128x256xi8>
    %7 = arith.sitofp %6 : vector<128x256xi8> to vector<128x256xf32>
    %8 = arith.truncf %7 : vector<128x256xf32> to vector<128x256xbf16>
    %c0_6 = arith.constant 0 : index
    %c0_7 = arith.constant 0 : index
    %9 = vector.load %arg10[%c0_6, %c0_7] : memref<128x32xf32, #tpu.memory_space<vmem>>, vector<128x32xf32>
    %10 = arith.truncf %5 : vector<256x32xf32> to vector<256x32xbf16>
    %cst_8 = arith.constant dense<0.000000e+00> : vector<128x32xf32>
    %11 = tpu.matmul %8, %10, %cst_8 {dimension_numbers = #tpu.dot_dimension_numbers<[1], [0], [0], [1], [0, 0, 1, 1], [], []>} : vector<128x256xbf16>, vector<256x32xbf16>, vector<128x32xf32> -> vector<128x32xf32>
    %12 = arith.addf %9, %11 : vector<128x32xf32>
    %c0_9 = arith.constant 0 : index
    %c0_10 = arith.constant 0 : index
    %13 = vector.load %arg10[%c0_9, %c0_10] : memref<128x32xf32, #tpu.memory_space<vmem>>, vector<128x32xf32>
    tpu.vector_store %arg10[%c0_9, %c0_10], %12 {strides = array<i32>} : memref<128x32xf32, #tpu.memory_space<vmem>>, vector<128x32xf32>,
    %c0_i32_11 = arith.constant 0 : i32
    %14 = arith.cmpi eq, %arg1, %c0_i32_11 : i32
    %15 = arith.extui %14 : i1 to i32
    %c0_i32_12 = arith.constant 0 : i32
    %16 = arith.cmpi ne, %15, %c0_i32_12 : i32
    scf.if %16 {
      %c0_13 = arith.constant 0 : index
      %c0_14 = arith.constant 0 : index
      %17 = vector.load %arg4[%c0_13, %c0_14] : memref<128x64xbf16, #tpu.memory_space<vmem>>, vector<128x64xbf16>
      %c0_15 = arith.constant 0 : index
      %c0_16 = arith.constant 0 : index
      %18 = vector.load %arg6[%c0_15, %c0_16] : memref<64x32xbf16, #tpu.memory_space<vmem>>, vector<64x32xbf16>
      %cst_17 = arith.constant dense<0.000000e+00> : vector<128x32xf32>
      %19 = tpu.matmul %17, %18, %cst_17 {dimension_numbers = #tpu.dot_dimension_numbers<[1], [0], [0], [1], [0, 0, 1, 1], [], []>} : vector<128x64xbf16>, vector<64x32xbf16>, vector<128x32xf32> -> vector<128x32xf32>
      %c0_18 = arith.constant 0 : index
      %c0_19 = arith.constant 0 : index
      %20 = vector.load %arg10[%c0_18, %c0_19] : memref<128x32xf32, #tpu.memory_space<vmem>>, vector<128x32xf32>
      %c0_20 = arith.constant 0 : index
      %c0_21 = arith.constant 0 : index
      %21 = vector.load %arg8[%c0_20, %c0_21] : memref<128x1xf32, #tpu.memory_space<vmem>>, vector<128x1xf32>
      %22 = vector.broadcast %21 : vector<128x1xf32> to vector<128x32xf32>
      %23 = arith.mulf %20, %22 : vector<128x32xf32>
      %24 = arith.addf %23, %19 : vector<128x32xf32>
      %c0_22 = arith.constant 0 : index
      %c0_23 = arith.constant 0 : index
      %25 = vector.load %arg7[%c0_22, %c0_23] : memref<1x32xf32, #tpu.memory_space<vmem>>, vector<1x32xf32>
      %26 = vector.broadcast %25 : vector<1x32xf32> to vector<128x32xf32>
      %27 = arith.addf %24, %26 : vector<128x32xf32>
      %cst_24 = arith.constant 0.000000e+00 : f32
      %28 = vector.broadcast %cst_24 : f32 to vector<128x32xf32>
      %29 = arith.maximumf %27, %28 : vector<128x32xf32>
      %30 = arith.truncf %29 : vector<128x32xf32> to vector<128x32xbf16>
      %c0_25 = arith.constant 0 : index
      %c0_26 = arith.constant 0 : index
      %31 = vector.load %arg9[%c0_25, %c0_26] : memref<128x32xbf16, #tpu.memory_space<vmem>>, vector<128x32xbf16>
      tpu.vector_store %arg9[%c0_25, %c0_26], %30 {strides = array<i32>} : memref<128x32xbf16, #tpu.memory_space<vmem>>, vector<128x32xbf16>,
    } else {
    }
    return
  }
  func.func @transform_0(%arg0: i32, %arg1: i32) -> (i32, i32) {
    %c0_i32 = arith.constant 0 : i32
    return %arg0, %arg1 : i32, i32
  }
  func.func @transform_1(%arg0: i32, %arg1: i32) -> (i32, i32) {
    %c0_i32 = arith.constant 0 : i32
    %c0_i32_0 = arith.constant 0 : i32
    return %arg1, %c0_i32 : i32, i32
  }
  func.func @transform_2(%arg0: i32, %arg1: i32) -> (i32, i32) {
    %c0_i32 = arith.constant 0 : i32
    %c0_i32_0 = arith.constant 0 : i32
    return %arg0, %c0_i32 : i32, i32
  }
  func.func @transform_3(%arg0: i32, %arg1: i32) -> (i32, i32) {
    %c0_i32 = arith.constant 0 : i32
    %c0_i32_0 = arith.constant 0 : i32
    %c0_i32_1 = arith.constant 0 : i32
    return %c0_i32, %c0_i32_0 : i32, i32
  }
  func.func @transform_4(%arg0: i32, %arg1: i32) -> (i32, i32) {
    %c0_i32 = arith.constant 0 : i32
    %c0_i32_0 = arith.constant 0 : i32
    %c0_i32_1 = arith.constant 0 : i32
    return %c0_i32, %c0_i32_0 : i32, i32
  }
  func.func @transform_5(%arg0: i32, %arg1: i32) -> (i32, i32) {
    %c0_i32 = arith.constant 0 : i32
    %c0_i32_0 = arith.constant 0 : i32
    %c0_i32_1 = arith.constant 0 : i32
    return %c0_i32, %c0_i32_0 : i32, i32
  }
  func.func @transform_6(%arg0: i32, %arg1: i32) -> (i32, i32) {
    %c0_i32 = arith.constant 0 : i32
    %c0_i32_0 = arith.constant 0 : i32
    return %arg0, %c0_i32 : i32, i32
  }
  func.func @transform_7(%arg0: i32, %arg1: i32) -> (i32, i32) {
    %c0_i32 = arith.constant 0 : i32
    %c0_i32_0 = arith.constant 0 : i32
    return %arg0, %c0_i32 : i32, i32
  }
}

module attributes {stable_mosaic.version = 11 : i64} {
  func.func @sage_layer2_kernel(%arg0: i32, %arg1: i32, %arg2: memref<128x256xi8, #tpu.memory_space<vmem>>, %arg3: memref<256x32xbf16, #tpu.memory_space<vmem>>, %arg4: memref<128x32xbf16, #tpu.memory_space<vmem>>, %arg5: memref<32x8xbf16, #tpu.memory_space<vmem>>, %arg6: memref<32x8xbf16, #tpu.memory_space<vmem>>, %arg7: memref<1x8xf32, #tpu.memory_space<vmem>>, %arg8: memref<128x1xf32, #tpu.memory_space<vmem>>, %arg9: memref<32x2xbf16, #tpu.memory_space<vmem>>, %arg10: memref<1x2xf32, #tpu.memory_space<vmem>>, %arg11: memref<128x8xf32, #tpu.memory_space<vmem>>, %arg12: memref<128x8xf32, #tpu.memory_space<vmem>>, %arg13: memref<128x2xf32, #tpu.memory_space<vmem>>, %arg14: memref<128x2xf32, #tpu.memory_space<vmem>>, %arg15: memref<128x8xf32, #tpu.memory_space<vmem>>) attributes {dimension_semantics = [#tpu.dimension_semantics<parallel>, #tpu.dimension_semantics<arbitrary>], iteration_bounds = array<i64: 2, 1>, scalar_prefetch = 0 : i64, scratch_operands = 1 : i64, tpu.core_type = #tpu.core_type<tc>, window_params = [{transform_indices = @transform_0, window_bounds = array<i64: 128, 256>}, {transform_indices = @transform_1, window_bounds = array<i64: 256, 32>}, {transform_indices = @transform_2, window_bounds = array<i64: 128, 32>}, {pipeline_mode = #tpu.pipeline_mode<synchronous>, transform_indices = @transform_3, window_bounds = array<i64: 32, 8>}, {pipeline_mode = #tpu.pipeline_mode<synchronous>, transform_indices = @transform_4, window_bounds = array<i64: 32, 8>}, {pipeline_mode = #tpu.pipeline_mode<synchronous>, transform_indices = @transform_5, window_bounds = array<i64: 1, 8>}, {transform_indices = @transform_6, window_bounds = array<i64: 128, 1>}, {pipeline_mode = #tpu.pipeline_mode<synchronous>, transform_indices = @transform_7, window_bounds = array<i64: 32, 2>}, {pipeline_mode = #tpu.pipeline_mode<synchronous>, transform_indices = @transform_8, window_bounds = array<i64: 1, 2>}, {transform_indices = @transform_9, window_bounds = array<i64: 128, 8>}, {transform_indices = @transform_10, window_bounds = array<i64: 128, 8>}, {transform_indices = @transform_11, window_bounds = array<i64: 128, 2>}, {transform_indices = @transform_12, window_bounds = array<i64: 128, 2>}]} {
    %c0_i32 = arith.constant 0 : i32
    %0 = arith.cmpi eq, %arg1, %c0_i32 : i32
    %1 = arith.extui %0 : i1 to i32
    %c0_i32_0 = arith.constant 0 : i32
    %2 = arith.cmpi ne, %1, %c0_i32_0 : i32
    scf.if %2 {
      %cst_13 = arith.constant 0.000000e+00 : f32
      %17 = vector.broadcast %cst_13 : f32 to vector<128x8xf32>
      %c0_14 = arith.constant 0 : index
      %c0_15 = arith.constant 0 : index
      %18 = vector.load %arg15[%c0_14, %c0_15] : memref<128x8xf32, #tpu.memory_space<vmem>>, vector<128x8xf32>
      tpu.vector_store %arg15[%c0_14, %c0_15], %17 {strides = array<i32>} : memref<128x8xf32, #tpu.memory_space<vmem>>, vector<128x8xf32>,
    } else {
    }
    %c0 = arith.constant 0 : index
    %c0_1 = arith.constant 0 : index
    %3 = vector.load %arg3[%c0, %c0_1] : memref<256x32xbf16, #tpu.memory_space<vmem>>, vector<256x32xbf16>
    %c0_2 = arith.constant 0 : index
    %c0_3 = arith.constant 0 : index
    %4 = vector.load %arg5[%c0_2, %c0_3] : memref<32x8xbf16, #tpu.memory_space<vmem>>, vector<32x8xbf16>
    %cst = arith.constant dense<0.000000e+00> : vector<256x8xf32>
    %5 = tpu.matmul %3, %4, %cst {dimension_numbers = #tpu.dot_dimension_numbers<[1], [0], [0], [1], [0, 0, 1, 1], [], []>} : vector<256x32xbf16>, vector<32x8xbf16>, vector<256x8xf32> -> vector<256x8xf32>
    %c0_4 = arith.constant 0 : index
    %c0_5 = arith.constant 0 : index
    %6 = vector.load %arg2[%c0_4, %c0_5] : memref<128x256xi8, #tpu.memory_space<vmem>>, vector<128x256xi8>
    %7 = arith.sitofp %6 : vector<128x256xi8> to vector<128x256xf32>
    %8 = arith.truncf %7 : vector<128x256xf32> to vector<128x256xbf16>
    %c0_6 = arith.constant 0 : index
    %c0_7 = arith.constant 0 : index
    %9 = vector.load %arg15[%c0_6, %c0_7] : memref<128x8xf32, #tpu.memory_space<vmem>>, vector<128x8xf32>
    %10 = arith.truncf %5 : vector<256x8xf32> to vector<256x8xbf16>
    %cst_8 = arith.constant dense<0.000000e+00> : vector<128x8xf32>
    %11 = tpu.matmul %8, %10, %cst_8 {dimension_numbers = #tpu.dot_dimension_numbers<[1], [0], [0], [1], [0, 0, 1, 1], [], []>} : vector<128x256xbf16>, vector<256x8xbf16>, vector<128x8xf32> -> vector<128x8xf32>
    %12 = arith.addf %9, %11 : vector<128x8xf32>
    %c0_9 = arith.constant 0 : index
    %c0_10 = arith.constant 0 : index
    %13 = vector.load %arg15[%c0_9, %c0_10] : memref<128x8xf32, #tpu.memory_space<vmem>>, vector<128x8xf32>
    tpu.vector_store %arg15[%c0_9, %c0_10], %12 {strides = array<i32>} : memref<128x8xf32, #tpu.memory_space<vmem>>, vector<128x8xf32>,
    %c0_i32_11 = arith.constant 0 : i32
    %14 = arith.cmpi eq, %arg1, %c0_i32_11 : i32
    %15 = arith.extui %14 : i1 to i32
    %c0_i32_12 = arith.constant 0 : i32
    %16 = arith.cmpi ne, %15, %c0_i32_12 : i32
    scf.if %16 {
      %c0_13 = arith.constant 0 : index
      %c0_14 = arith.constant 0 : index
      %17 = vector.load %arg4[%c0_13, %c0_14] : memref<128x32xbf16, #tpu.memory_space<vmem>>, vector<128x32xbf16>
      %c0_15 = arith.constant 0 : index
      %c0_16 = arith.constant 0 : index
      %18 = vector.load %arg6[%c0_15, %c0_16] : memref<32x8xbf16, #tpu.memory_space<vmem>>, vector<32x8xbf16>
      %cst_17 = arith.constant dense<0.000000e+00> : vector<128x8xf32>
      %19 = tpu.matmul %17, %18, %cst_17 {dimension_numbers = #tpu.dot_dimension_numbers<[1], [0], [0], [1], [0, 0, 1, 1], [], []>} : vector<128x32xbf16>, vector<32x8xbf16>, vector<128x8xf32> -> vector<128x8xf32>
      %c0_18 = arith.constant 0 : index
      %c0_19 = arith.constant 0 : index
      %20 = vector.load %arg15[%c0_18, %c0_19] : memref<128x8xf32, #tpu.memory_space<vmem>>, vector<128x8xf32>
      %c0_20 = arith.constant 0 : index
      %c0_21 = arith.constant 0 : index
      %21 = vector.load %arg8[%c0_20, %c0_21] : memref<128x1xf32, #tpu.memory_space<vmem>>, vector<128x1xf32>
      %22 = vector.broadcast %21 : vector<128x1xf32> to vector<128x8xf32>
      %23 = arith.mulf %20, %22 : vector<128x8xf32>
      %24 = arith.addf %23, %19 : vector<128x8xf32>
      %c0_22 = arith.constant 0 : index
      %c0_23 = arith.constant 0 : index
      %25 = vector.load %arg7[%c0_22, %c0_23] : memref<1x8xf32, #tpu.memory_space<vmem>>, vector<1x8xf32>
      %26 = vector.broadcast %25 : vector<1x8xf32> to vector<128x8xf32>
      %27 = arith.addf %24, %26 : vector<128x8xf32>
      %c0_24 = arith.constant 0 : index
      %c0_25 = arith.constant 0 : index
      %28 = vector.load %arg11[%c0_24, %c0_25] : memref<128x8xf32, #tpu.memory_space<vmem>>, vector<128x8xf32>
      tpu.vector_store %arg11[%c0_24, %c0_25], %27 {strides = array<i32>} : memref<128x8xf32, #tpu.memory_space<vmem>>, vector<128x8xf32>,
      %cst_26 = arith.constant dense<0xFF800000> : vector<128xf32>
      %29 = vector.multi_reduction <maximumf>, %27, %cst_26 [1] : vector<128x8xf32> to vector<128xf32>
      %30 = vector.shape_cast %29 : vector<128xf32> to vector<128x1xf32>
      %31 = vector.broadcast %30 : vector<128x1xf32> to vector<128x8xf32>
      %32 = arith.subf %27, %31 : vector<128x8xf32>
      %33 = math.exp %32 : vector<128x8xf32>
      %cst_27 = arith.constant dense<0.000000e+00> : vector<128xf32>
      %34 = vector.multi_reduction <add>, %33, %cst_27 [1] : vector<128x8xf32> to vector<128xf32>
      %35 = vector.shape_cast %34 : vector<128xf32> to vector<128x1xf32>
      %36 = math.log %35 : vector<128x1xf32>
      %37 = vector.broadcast %36 : vector<128x1xf32> to vector<128x8xf32>
      %38 = arith.subf %32, %37 : vector<128x8xf32>
      %c0_28 = arith.constant 0 : index
      %c0_29 = arith.constant 0 : index
      %39 = vector.load %arg12[%c0_28, %c0_29] : memref<128x8xf32, #tpu.memory_space<vmem>>, vector<128x8xf32>
      tpu.vector_store %arg12[%c0_28, %c0_29], %38 {strides = array<i32>} : memref<128x8xf32, #tpu.memory_space<vmem>>, vector<128x8xf32>,
      %c0_30 = arith.constant 0 : index
      %c0_31 = arith.constant 0 : index
      %40 = vector.load %arg9[%c0_30, %c0_31] : memref<32x2xbf16, #tpu.memory_space<vmem>>, vector<32x2xbf16>
      %cst_32 = arith.constant dense<0.000000e+00> : vector<128x2xf32>
      %41 = tpu.matmul %17, %40, %cst_32 {dimension_numbers = #tpu.dot_dimension_numbers<[1], [0], [0], [1], [0, 0, 1, 1], [], []>} : vector<128x32xbf16>, vector<32x2xbf16>, vector<128x2xf32> -> vector<128x2xf32>
      %c0_33 = arith.constant 0 : index
      %c0_34 = arith.constant 0 : index
      %42 = vector.load %arg10[%c0_33, %c0_34] : memref<1x2xf32, #tpu.memory_space<vmem>>, vector<1x2xf32>
      %43 = vector.broadcast %42 : vector<1x2xf32> to vector<128x2xf32>
      %44 = arith.addf %41, %43 : vector<128x2xf32>
      %c0_35 = arith.constant 0 : index
      %c0_36 = arith.constant 0 : index
      %45 = vector.load %arg13[%c0_35, %c0_36] : memref<128x2xf32, #tpu.memory_space<vmem>>, vector<128x2xf32>
      tpu.vector_store %arg13[%c0_35, %c0_36], %44 {strides = array<i32>} : memref<128x2xf32, #tpu.memory_space<vmem>>, vector<128x2xf32>,
      %cst_37 = arith.constant dense<0xFF800000> : vector<128xf32>
      %46 = vector.multi_reduction <maximumf>, %44, %cst_37 [1] : vector<128x2xf32> to vector<128xf32>
      %47 = vector.shape_cast %46 : vector<128xf32> to vector<128x1xf32>
      %48 = vector.broadcast %47 : vector<128x1xf32> to vector<128x2xf32>
      %49 = arith.subf %44, %48 : vector<128x2xf32>
      %50 = math.exp %49 : vector<128x2xf32>
      %cst_38 = arith.constant dense<0.000000e+00> : vector<128xf32>
      %51 = vector.multi_reduction <add>, %50, %cst_38 [1] : vector<128x2xf32> to vector<128xf32>
      %52 = vector.shape_cast %51 : vector<128xf32> to vector<128x1xf32>
      %53 = math.log %52 : vector<128x1xf32>
      %54 = vector.broadcast %53 : vector<128x1xf32> to vector<128x2xf32>
      %55 = arith.subf %49, %54 : vector<128x2xf32>
      %c0_39 = arith.constant 0 : index
      %c0_40 = arith.constant 0 : index
      %56 = vector.load %arg14[%c0_39, %c0_40] : memref<128x2xf32, #tpu.memory_space<vmem>>, vector<128x2xf32>
      tpu.vector_store %arg14[%c0_39, %c0_40], %55 {strides = array<i32>} : memref<128x2xf32, #tpu.memory_space<vmem>>, vector<128x2xf32>,
    } else {
    }
    return
  }
  func.func @transform_0(%arg0: i32, %arg1: i32) -> (i32, i32) {
    %c0_i32 = arith.constant 0 : i32
    return %arg0, %arg1 : i32, i32
  }
  func.func @transform_1(%arg0: i32, %arg1: i32) -> (i32, i32) {
    %c0_i32 = arith.constant 0 : i32
    %c0_i32_0 = arith.constant 0 : i32
    return %arg1, %c0_i32 : i32, i32
  }
  func.func @transform_2(%arg0: i32, %arg1: i32) -> (i32, i32) {
    %c0_i32 = arith.constant 0 : i32
    %c0_i32_0 = arith.constant 0 : i32
    return %arg0, %c0_i32 : i32, i32
  }
  func.func @transform_3(%arg0: i32, %arg1: i32) -> (i32, i32) {
    %c0_i32 = arith.constant 0 : i32
    %c0_i32_0 = arith.constant 0 : i32
    %c0_i32_1 = arith.constant 0 : i32
    return %c0_i32, %c0_i32_0 : i32, i32
  }
  func.func @transform_4(%arg0: i32, %arg1: i32) -> (i32, i32) {
    %c0_i32 = arith.constant 0 : i32
    %c0_i32_0 = arith.constant 0 : i32
    %c0_i32_1 = arith.constant 0 : i32
    return %c0_i32, %c0_i32_0 : i32, i32
  }
  func.func @transform_5(%arg0: i32, %arg1: i32) -> (i32, i32) {
    %c0_i32 = arith.constant 0 : i32
    %c0_i32_0 = arith.constant 0 : i32
    %c0_i32_1 = arith.constant 0 : i32
    return %c0_i32, %c0_i32_0 : i32, i32
  }
  func.func @transform_6(%arg0: i32, %arg1: i32) -> (i32, i32) {
    %c0_i32 = arith.constant 0 : i32
    %c0_i32_0 = arith.constant 0 : i32
    return %arg0, %c0_i32 : i32, i32
  }
  func.func @transform_7(%arg0: i32, %arg1: i32) -> (i32, i32) {
    %c0_i32 = arith.constant 0 : i32
    %c0_i32_0 = arith.constant 0 : i32
    %c0_i32_1 = arith.constant 0 : i32
    return %c0_i32, %c0_i32_0 : i32, i32
  }
  func.func @transform_8(%arg0: i32, %arg1: i32) -> (i32, i32) {
    %c0_i32 = arith.constant 0 : i32
    %c0_i32_0 = arith.constant 0 : i32
    %c0_i32_1 = arith.constant 0 : i32
    return %c0_i32, %c0_i32_0 : i32, i32
  }
  func.func @transform_9(%arg0: i32, %arg1: i32) -> (i32, i32) {
    %c0_i32 = arith.constant 0 : i32
    %c0_i32_0 = arith.constant 0 : i32
    return %arg0, %c0_i32 : i32, i32
  }
  func.func @transform_10(%arg0: i32, %arg1: i32) -> (i32, i32) {
    %c0_i32 = arith.constant 0 : i32
    %c0_i32_0 = arith.constant 0 : i32
    return %arg0, %c0_i32 : i32, i32
  }
  func.func @transform_11(%arg0: i32, %arg1: i32) -> (i32, i32) {
    %c0_i32 = arith.constant 0 : i32
    %c0_i32_0 = arith.constant 0 : i32
    return %arg0, %c0_i32 : i32, i32
  }
  func.func @transform_12(%arg0: i32, %arg1: i32) -> (i32, i32) {
    %c0_i32 = arith.constant 0 : i32
    %c0_i32_0 = arith.constant 0 : i32
    return %arg0, %c0_i32 : i32, i32
  }
}

</mosaic_0001>

<bundles_post_ra>
// kernel: stand_sage_forward.3
= control target key start
LH: loop header
LB: loop body
LE: loop exit
PB: predicated region body
PF: predicated region fallthrough
CT: control target
= control target key end

     0   :  { %s2595_s21 = smov 0   ;;  %s2597_s22 = smov 0   ;;  %s3555_s0 = inlined_call_operand.vmem [shape: s8[256,256], index: 0, kind: input, shape index: {}]   ;;  %s3556_s1 = inlined_call_operand.vmem [shape: bf16[256,32], index: 1, kind: input, shape index: {}, may-alias: {1,2}]   ;;  %s3557_s2 = inlined_call_operand.vmem [shape: bf16[256,32], index: 2, kind: input, shape index: {}, may-alias: {1,2}]   ;;  %s3558_s3 = inlined_call_operand.vmem [shape: bf16[32,8], index: 3, kind: input, shape index: {}]   ;;  %s3559_s4 = inlined_call_operand.vmem [shape: bf16[32,8], index: 4, kind: input, shape index: {}]   ;;  %s3560_s5 = inlined_call_operand.vmem [shape: f32[1,8], index: 5, kind: input, shape index: {}]   ;;  %s3561_s6 = inlined_call_operand.vmem [shape: f32[256,1], index: 6, kind: input, shape index: {}]   ;;  %s3562_s7 = inlined_call_operand.vmem [shape: bf16[32,2], index: 7, kind: input, shape index: {}]   ;;  %s3563_s8 = inlined_call_operand.vmem [shape: f32[1,2], index: 8, kind: input, shape index: {}]   ;;  %s3564_s9 = inlined_call_operand.vmem [shape: f32[256,8], index: 9, kind: output, shape index: {0}]   ;;  %s3565_s10 = inlined_call_operand.vmem [shape: f32[256,8], index: 10, kind: output, shape index: {1}]   ;;  %s3566_s11 = inlined_call_operand.vmem [shape: f32[256,2], index: 11, kind: output, shape index: {2}]   ;;  %s3567_s12 = inlined_call_operand.vmem [shape: f32[256,2], index: 12, kind: output, shape index: {3}]  }
   0x1   :  { %s2599_s23 = smov 0  }
   0x2 LB: > { %s35_s24 = sadd.s32 1, %s2522_s22  ;;  %p2140_p0 = scmp.ge.s32.totalorder %s2526_s23, 1  ;;  %s2526_s23 = sphi %s2599_s23, %s23_s23   ;;  %s2522_s22 = sphi %s2597_s22, %s3581_s22   ;;  %s2518_s21 = sphi %s2595_s21, %s3580_s21  }
   0x3   : > { %p37_p1 = scmp.ge.s32.totalorder %s35_s24, 2  ;;  %p423_p2 = scmp.lt.s32.totalorder %s2526_s23, 3 }
   0x5   : > { %s3583_s24 = smov (%p37_p1, %s35_s24), 0  ;;  %p424_p3 = pnand %p2140_p0, %p423_p2 }
   0x7   : > { %427 = sbr.rel (%p424_p3) target bundleno = 937 (0x3a9), region = 56 }
   0xc   : > { %v2328_v0 = vld [vmem:[%s3558_s3 + $0x8] sm:$0xff]  ;;  %s2144_s29 = sshll.u32 %s2518_s21, 4  ;;  %v2327_v2 = vld [vmem:[%s3558_s3] sm:$0xff]  ;;  %vm704_vm0 = vcmask 261120   ;;  %v2313_v8 = vld [vmem:[%s3556_s1 + $0x10] sm:$0xff]  ;;  %v2528_v23 = vmov 0  }
   0xd   : > { %v2621_v1 = vld [vmem:[%s3559_s4 + $0x8] sm:$0xff]  ;;  %p519_p4 = scmp.lt.s32.totalorder %s2144_s29, 31  ;;  %759 = vmatpush.bf16.msra.mxu0 %v2328_v0  ;;  %v2631_v3 = vld [vmem:[%s3559_s4] sm:$0xff]  ;;  %2341 = vmatpush.bf16.msra.mxu1 %v2328_v0  ;;  %v2314_v12 = vld [vmem:[%s3556_s1 + $0x18] sm:$0xff]  ;;  %vm1698_vm1 = vcmask 15360   ;;  %vm559_vm2 = vcmask 64512  }
   0xe   : > { %2343 = vmatpush.bf16.msra.mxu3 %v2621_v1  ;;  %v2311_v4 = vld [vmem:[%s3556_s1] sm:$0xff]  ;;  %v2312_v6 = vld [vmem:[%s3556_s1 + $0x8] sm:$0xff]  ;;  %v2325_v19 = vld [vmem:[%s3556_s1 + $0x70] sm:$0xff]  ;;  %2371 = vset.pattern.permute.xlu0 %v2528_v23 }
   0xf   : > { %s3585_s29 = smov (!%p519_p4, %s2144_s29), 31  ;;  %v2340_v10 = vld [vmem:[%s3562_s7 + $0x8] sm:$0xff]  ;;  %v2339_v11 = vld [vmem:[%s3562_s7] sm:$0xff]  ;;  %v2317_v20 = vld [vmem:[%s3556_s1 + $0x30] sm:$0xff]  ;;  %2372 = vset.pattern.permute.xlu1 %v2528_v23  ;;  %2373 = vset.pattern.permute.xlu2 %v2528_v23 }
  0x10   : > { %s2145_s18 = sshll.u32 %s3585_s29, 2  ;;  %v2315_v14 = vld [vmem:[%s3556_s1 + $0x20] sm:$0xff]  ;;  %v2324_v16 = vld [vmem:[%s3556_s1 + $0x68] sm:$0xff]  ;;  %s2717_s17 = sshll.u32 %s3585_s29, 3  ;;  %v2326_v22 = vld [vmem:[%s3556_s1 + $0x78] sm:$0xff] }
  0x11   : > { %760 = vmatpush.bf16.msra.mxu0 %v2327_v2  ;;  %s2643_s25 = scalar_lea.vmem %s3557_s2, %s2145_s18  ;;  %2342 = vmatpush.bf16.msra.mxu1 %v2327_v2  ;;  %v2316_v17 = vld [vmem:[%s3556_s1 + $0x28] sm:$0xff]  ;;  %s2726_s20 = scalar_lea.vmem %s3561_s6, %s2717_s17  ;;  %v2318_v25 = vld [vmem:[%s3556_s1 + $0x38] sm:$0xff]  ;;  %v2319_v30 = vld [vmem:[%s3556_s1 + $0x40] sm:$0xff] }
  0x12   : > { %2344 = vmatpush.bf16.msra.mxu3 %v2631_v3  ;;  %v2646_v5 = vld [vmem:[%s2643_s25 + $0x18] sm:$0xff]  ;;  %v2655_v7 = vld [vmem:[%s2643_s25 + $0x20] sm:$0xff]  ;;  %v2664_v9 = vld [vmem:[%s2643_s25 + $0x28] sm:$0xff]  ;;  %s2842_s13 = scalar_lea.vmem %s3566_s11, %s2717_s17  ;;  %s3187_s30 = scalar_lea.vmem %s3564_s9, %s2717_s17 }
  0x13   : > { %v2679_v13 = vld [vmem:[%s2643_s25 + $0x30] sm:$0xff]  ;;  %v2688_v15 = vld [vmem:[%s2643_s25 + $0x38] sm:$0xff]  ;;  %v2701_v18 = vld [vmem:[%s2643_s25] sm:$0xff] }
  0x14   : > { %2228 = vmatmul.msk.bf16.vlgmr.msra.gmra.mxu0 %vm704_vm0, %v2311_v4  ;;  %2241 = vmatmul.msk.bf16.vlgmr.msra.gmra.mxu1 %vm704_vm0, %v2324_v16  ;;  %v2714_v21 = vld [vmem:[%s2643_s25 + $0x8] sm:$0xff]  ;;  %v1257_v24 = vld [vmem:[%s2726_s20] sm:$0xff]  ;;  %v2737_v26 = vld [vmem:[%s2643_s25 + $0x10] sm:$0xff]  ;;  %s2141_s25 = sshll.u32 %s2518_s21, 2 }
  0x15   : > { %2287 = vmatmul.msk.bf16.vlgmr.msra.gmra.mxu3 %vm704_vm0, %v2646_v5  ;;  %1275 = vperm.xlu0 %2371, %v1257_v24   ;;  %v1258_v27 = vld [vmem:[%s2726_s20 + $0x8] sm:$0xff]  ;;  %v1259_v28 = vld [vmem:[%s2726_s20 + $0x10] sm:$0xff]  ;;  %v1260_v31 = vld [vmem:[%s2726_s20 + $0x18] sm:$0xff]  ;;  %p502_p5 = scmp.lt.s32.totalorder %s2141_s25, 7 }
  0x16   : > { %1655 = vmatpush.bf16.msrb.mxu3 %v2340_v10  ;;  %v1263_v29 = vld [vmem:[%s2726_s20 + $0x30] sm:$0xff]  ;;  %1285 = vperm.xlu1 %2372, %v1259_v28   ;;  %v1266_v32 = vld [vmem:[%s2726_s20 + $0x48] sm:$0xff]  ;;  %v1261_v34 = vld [vmem:[%s2726_s20 + $0x20] sm:$0xff] }
  0x17   : > { %1295 = vperm.xlu2 %2373, %v1261_v34   ;;  %v1264_v36 = vld [vmem:[%s2726_s20 + $0x38] sm:$0xff]  ;;  %v1269_v37 = vld [vmem:[%s2726_s20 + $0x60] sm:$0xff]  ;;  %v1262_v39 = vld [vmem:[%s2726_s20 + $0x28] sm:$0xff]  ;;  %s3587_s25 = smov (!%p502_p5, %s2141_s25), 7 }
  0x18   : > { %v2320_v42 = vld [vmem:[%s3556_s1 + $0x48] sm:$0xff]  ;;  %v1267_v43 = vld [vmem:[%s2726_s20 + $0x50] sm:$0xff]  ;;  %v1272_v44 = vld [vmem:[%s2726_s20 + $0x78] sm:$0xff]  ;;  %s2310_s21 = sshll.u32 %s3587_s25, 4 }
  0x19   : > { %v1265_v46 = vld [vmem:[%s2726_s20 + $0x40] sm:$0xff]  ;;  %v1270_v48 = vld [vmem:[%s2726_s20 + $0x68] sm:$0xff]  ;;  %v1268_v50 = vld [vmem:[%s2726_s20 + $0x58] sm:$0xff]  ;;  %s2999_s16 = scalar_lea.vmem %s3555_s0, %s2310_s21  ;;  %s3487_s21 = scalar_lea.vmem %s3565_s10, %s2717_s17 }
  0x1a   : > { %1656 = vmatpush.bf16.msrb.mxu3 %v2339_v11  ;;  %v2321_v53 = vld [vmem:[%s3556_s1 + $0x50] sm:$0xff]  ;;  %v2322_v60 = vld [vmem:[%s3556_s1 + $0x58] sm:$0xff]  ;;  %v2323_v4 = vld [vmem:[%s3556_s1 + $0x60] sm:$0xff] }
  0x1b   : > { %v1271_v55 = vld [vmem:[%s2726_s20 + $0x70] sm:$0xff]  ;;  %s3133_s20 = scalar_lea.vmem %s3567_s12, %s2717_s17 }
  0x1d   : > { %1280 = vperm.xlu0 %2371, %v1258_v27  }
  0x1e   : > { %1290 = vperm.xlu1 %2372, %v1260_v31  }
  0x1f   : > { %1300 = vperm.xlu2 %2373, %v1262_v39  }
  0x24   : > { %2229 = vmatmul.msk.bf16.gmra.mxu0 %vm704_vm0, %v2312_v6  ;;  %2242 = vmatmul.msk.bf16.gmra.mxu1 %vm704_vm0, %v2325_v19 }
  0x25   : > { %2288 = vmatmul.msk.bf16.gmra.mxu3 %vm704_vm0, %v2655_v7  ;;  %1305 = vperm.xlu0 %2371, %v1263_v29  }
  0x26   : > { %1310 = vperm.xlu1 %2372, %v1264_v36  }
  0x27   : > { %1315 = vperm.xlu2 %2373, %v1265_v46  }
  0x2d   : > { %1320 = vperm.xlu0 %2371, %v1266_v32  }
  0x2e   : > { %1325 = vperm.xlu1 %2372, %v1267_v43  }
  0x2f   : > { %1330 = vperm.xlu2 %2373, %v1268_v50  }
  0x34   : > { %2230 = vmatmul.msk.bf16.gmra.mxu0 %vm704_vm0, %v2313_v8  ;;  %2243 = vmatmul.msk.bf16.gmra.mxu1 %vm704_vm0, %v2326_v22 }
  0x35   : > { %2289 = vmatmul.msk.bf16.gmra.mxu3 %vm704_vm0, %v2664_v9  ;;  %1335 = vperm.xlu0 %2371, %v1269_v37  }
  0x36   : > { %1340 = vperm.xlu1 %2372, %v1270_v48  }
  0x37   : > { %1345 = vperm.xlu2 %2373, %v1271_v55  }
  0x3d   : > { %1350 = vperm.xlu0 %2371, %v1272_v44  }
  0x44   : > { %2231 = vmatmul.msk.bf16.gmra.mxu0 %vm704_vm0, %v2314_v12 }
  0x45   : > { %2290 = vmatmul.msk.bf16.gmra.mxu3 %vm704_vm0, %v2679_v13 }
  0x54   : > { %2232 = vmatmul.msk.bf16.gmra.mxu0 %vm704_vm0, %v2315_v14 }
  0x55   : > { %2291 = vmatmul.msk.bf16.gmra.mxu3 %vm704_vm0, %v2688_v15 }
  0x64   : > { %2233 = vmatmul.msk.bf16.gmra.mxu0 %vm704_vm0, %v2316_v17 }
  0x65   : > { %2300 = vmatmul.msk.bf16.vlgmr.msrb.gmra.mxu3 %vm704_vm0, %v2701_v18 }
  0x74   : > { %2234 = vmatmul.msk.bf16.gmra.mxu0 %vm704_vm0, %v2317_v20 }
  0x75   : > { %2301 = vmatmul.msk.bf16.gmra.mxu3 %vm704_vm0, %v2714_v21 }
  0x84   : > { %2235 = vmatmul.msk.bf16.gmra.mxu0 %vm704_vm0, %v2318_v25 }
  0x85   : > { %2302 = vmatmul.msk.bf16.gmra.mxu3 %vm704_vm0, %v2737_v26 }
  0x91   : > { %v2750_v33 = vpop.f32.mrf.mxu0  ;;  %v827_v6 = vpop.f32.mrf.mxu1 }
  0x94   : > { %2236 = vmatmul.msk.bf16.gmra.mxu0 %vm704_vm0, %v2319_v30 }
  0x95   : > { %2303 = vmatmul.msk.bf16.gmra.mxu3 %vm704_vm0, %v2646_v5 }
  0x98   : > { %v2756_v35 = vpop.f32.mrf.mxu3 }
  0x99   : > { %v2760_v38 = vpop.f32.mrf.mxu0 }
  0x9a   : > { %v946_v40 = vpack.c.bf16 %v2760_v38, %v2750_v33  ;;  %v2953_v38 = vpop.permute.xlu1 %1285 }
  0xa0   : > { %v2765_v41 = vpop.f32.mrf.mxu3 }
  0xa1   : > { %v2772_v45 = vpop.f32.mrf.mxu0 }
  0xa4   : > { %2237 = vmatmul.msk.bf16.gmra.mxu0 %vm704_vm0, %v2320_v42 }
  0xa5   : > { %2304 = vmatmul.msk.bf16.gmra.mxu3 %vm704_vm0, %v2655_v7 }
  0xa8   : > { %v2778_v47 = vpop.f32.mrf.mxu3 }
  0xa9   : > { %v2781_v49 = vpop.f32.mrf.mxu0 }
  0xaa   : > { %v947_v51 = vpack.c.bf16 %v2781_v49, %v2772_v45 }
  0xb0   : > { %v2786_v52 = vpop.f32.mrf.mxu3 }
  0xb1   : > { %v2791_v54 = vpop.f32.mrf.mxu0 }
  0xb4   : > { %2238 = vmatmul.msk.bf16.gmra.mxu0 %vm704_vm0, %v2321_v53 }
  0xb5   : > { %2305 = vmatmul.msk.bf16.gmra.mxu3 %vm704_vm0, %v2664_v9  ;;  %v829_v9 = vpop.f32.mrf.mxu1 }
  0xb6   : > { %v959_v43 = vpack.c.bf16 %v829_v9, %v827_v6 }
  0xb8   : > { %v2797_v56 = vpop.f32.mrf.mxu3 }
  0xb9   : > { %v2799_v57 = vpop.f32.mrf.mxu0 }
  0xba   : > { %v948_v58 = vpack.c.bf16 %v2799_v57, %v2791_v54 }
  0xbd   : > { %v832_v12 = vpop.f32.mrf.mxu1 }
  0xc0   : > { %v2803_v59 = vpop.f32.mrf.mxu3 }
  0xc1   : > { %v2808_v61 = vpop.f32.mrf.mxu0 }
  0xc4   : > { %2239 = vmatmul.msk.bf16.gmra.mxu0 %vm704_vm0, %v2322_v60 }
  0xc5   : > { %2306 = vmatmul.msk.bf16.gmra.mxu3 %vm704_vm0, %v2679_v13  ;;  %v2836_v13 = vld [vmem:[%s3563_s8] ss:$0 sm:$0xff]  ;;  %v834_v19 = vpop.f32.mrf.mxu1 }
  0xc6   : > { %v960_v37 = vpack.c.bf16 %v834_v19, %v832_v12 }
  0xc8   : > { %v2813_v62 = vpop.f32.mrf.mxu3 }
  0xc9   : > { %v2815_v63 = vpop.f32.mrf.mxu0 }
  0xca   : > { %v949_v0 = vpack.c.bf16 %v2815_v63, %v2808_v61 }
  0xcd   : > { %v837_v25 = vpop.f32.mrf.mxu1 }
  0xd0   : > { %v2819_v2 = vpop.f32.mrf.mxu3 }
  0xd1   : > { %v2824_v5 = vpop.f32.mrf.mxu0 }
  0xd4   : > { %2240 = vmatmul.msk.bf16.gmra.mxu0 %vm704_vm0, %v2323_v4 }
  0xd5   : > { %2307 = vmatmul.msk.bf16.gmra.mxu3 %vm704_vm0, %v2688_v15  ;;  %v839_v31 = vpop.f32.mrf.mxu1 }
  0xd6   : > { %v961_v32 = vpack.c.bf16 %v839_v31, %v837_v25  ;;  %v2923_v25 = vpop.permute.xlu0 %1275  ;;  %v2967_v31 = vpop.permute.xlu1 %1290 }
  0xd8   : > { %v2829_v7 = vpop.f32.mrf.mxu3  ;;  %1011 = vmatpush.bf16.msra.mxu2 %v961_v32 }
  0xd9   : > { %v784_v8 = vpop.f32.mrf.mxu0 }
  0xdc   : > { %1012 = vmatpush.bf16.msra.mxu2 %v960_v37 }
  0xde   : > { %v2941_v45 = vpop.permute.xlu0 %1280 }
  0xe0   : > { %v2831_v10 = vpop.f32.mrf.mxu3  ;;  %1013 = vmatpush.bf16.msra.mxu2 %v959_v43 }
  0xe1   : > { %v787_v11 = vpop.f32.mrf.mxu0 }
  0xe8   : > { %v1658_v14 = vpop.f32.mrf.mxu3 }
  0xe9   : > { %v2845_v15 = vadd.f32 %v2836_v13, %v1658_v14  ;;  %v789_v16 = vpop.f32.mrf.mxu0  ;;  %v950_v14 = vpack.c.bf16 %v784_v8, %v2824_v5 }
  0xea   : > { %v951_v9 = vpack.c.bf16 %v789_v16, %v787_v11 }
  0xeb   : > { %1699 = vst.msk [vmem:[%s2842_s13] sm:$0xff] %vm1698_vm1, %v2845_v15  ;;  %v1715_v17 = vsel %vm1698_vm1, %v2845_v15, -inf }
  0xec   : > { %1716 = vmax.xlane.f32.xlu0 %v1715_v17 }
  0xf0   : > { %v1660_v20 = vpop.f32.mrf.mxu3 }
  0xf1   : > { %v2853_v22 = vadd.f32 %v2836_v13, %v1660_v20  ;;  %v792_v23 = vpop.f32.mrf.mxu0 }
  0xf3   : > { %1700 = vst.msk [vmem:[%s2842_s13 + $0x8] sm:$0xff] %vm1698_vm1, %v2853_v22  ;;  %v1718_v24 = vsel %vm1698_vm1, %v2853_v22, -inf }
  0xf4   : > { %1719 = vmax.xlane.f32.xlu1 %v1718_v24 }
  0xf8   : > { %v1663_v27 = vpop.f32.mrf.mxu3 }
  0xf9   : > { %v2861_v28 = vadd.f32 %v2836_v13, %v1663_v27  ;;  %v794_v29 = vpop.f32.mrf.mxu0 }
  0xfa   : > { %v952_v55 = vpack.c.bf16 %v794_v29, %v792_v23 }
  0xfb   : > { %1701 = vst.msk [vmem:[%s2842_s13 + $0x10] sm:$0xff] %vm1698_vm1, %v2861_v28  ;;  %v1721_v30 = vsel %vm1698_vm1, %v2861_v28, -inf }
  0xfc   : > { %1722 = vmax.xlane.f32.xlu2 %v1721_v30  ;;  %v2965_v30 = vpop.permute.xlu2 %1295 }
 0x100   : > { %v1665_v34 = vpop.f32.mrf.mxu3 }
 0x101   : > { %v2869_v36 = vadd.f32 %v2836_v13, %v1665_v34  ;;  %v797_v39 = vpop.f32.mrf.mxu0 }
 0x103   : > { %1702 = vst.msk [vmem:[%s2842_s13 + $0x18] sm:$0xff] %vm1698_vm1, %v2869_v36  ;;  %v1724_v42 = vsel %vm1698_vm1, %v2869_v36, -inf }
 0x104   : > { %1725 = vmax.xlane.f32.xlu0 %v1724_v42  ;;  %v2980_v43 = vpop.permute.xlu2 %1300 }
 0x105   : > { %3571 = vst [vmem:[#allocation3_spill] sm:$0xff] %v2980_v43 }
 0x108   : > { %v1668_v44 = vpop.f32.mrf.mxu3 }
 0x109   : > { %v2877_v46 = vadd.f32 %v2836_v13, %v1668_v44  ;;  %v799_v48 = vpop.f32.mrf.mxu0 }
 0x10a   : > { %v953_v50 = vpack.c.bf16 %v799_v48, %v797_v39 }
 0x10b   : > { %1703 = vst.msk [vmem:[%s2842_s13 + $0x20] sm:$0xff] %vm1698_vm1, %v2877_v46  ;;  %v1727_v53 = vsel %vm1698_vm1, %v2877_v46, -inf }
 0x10c   : > { %1728 = vmax.xlane.f32.xlu1 %v1727_v53  ;;  %962 = vmatpush.bf16.msrb.mxu1 %v953_v50  ;;  %v2985_v50 = vpop.permute.xlu1 %1310 }
 0x110   : > { %v1670_v60 = vpop.f32.mrf.mxu3  ;;  %963 = vmatpush.bf16.msrb.mxu1 %v952_v55 }
 0x111   : > { %v2885_v4 = vadd.f32 %v2836_v13, %v1670_v60  ;;  %v2887_v6 = vpop.f32.mrf.mxu0 }
 0x113   : > { %1704 = vst.msk [vmem:[%s2842_s13 + $0x28] sm:$0xff] %vm1698_vm1, %v2885_v4  ;;  %v1730_v12 = vsel %vm1698_vm1, %v2885_v4, -inf }
 0x114   : > { %1731 = vmax.xlane.f32.xlu2 %v1730_v12  ;;  %964 = vmatpush.bf16.msrb.mxu1 %v951_v9  ;;  %v842_v12 = vld [vmem:[%s2999_s16] sm:$0xff] }
 0x115   : > { %v854_v11 = vunpack.c.2.s8 %v842_v12 }
 0x118   : > { %v1673_v17 = vpop.f32.mrf.mxu3  ;;  %965 = vmatpush.bf16.msrb.mxu1 %v950_v14 }
 0x119   : > { %v2896_v19 = vadd.f32 %v2836_v13, %v1673_v17  ;;  %v2898_v20 = vpop.f32.mrf.mxu0  ;;  %v850_v17 = vunpack.c.0.s8 %v842_v12 }
 0x11b   : > { %1705 = vst.msk [vmem:[%s2842_s13 + $0x30] sm:$0xff] %vm1698_vm1, %v2896_v19  ;;  %v1733_v16 = vsel %vm1698_vm1, %v2896_v19, -inf }
 0x11c   : > { %1734 = vmax.xlane.f32.xlu0 %v1733_v16  ;;  %966 = vmatpush.bf16.msrb.mxu1 %v949_v0  ;;  %v852_v16 = vunpack.c.1.s8 %v842_v12 }
 0x120   : > { %v1675_v5 = vpop.f32.mrf.mxu3  ;;  %967 = vmatpush.bf16.msrb.mxu1 %v948_v58 }
 0x121   : > { %v2911_v8 = vadd.f32 %v2836_v13, %v1675_v5  ;;  %v2916_v23 = vpop.f32.mrf.mxu0 }
 0x123   : > { %1706 = vst.msk [vmem:[%s2842_s13 + $0x38] sm:$0xff] %vm1698_vm1, %v2911_v8  ;;  %v1736_v24 = vsel %vm1698_vm1, %v2911_v8, -inf }
 0x124   : > { %1737 = vmax.xlane.f32.xlu1 %v1736_v24  ;;  %968 = vmatpush.bf16.msrb.mxu1 %v947_v51  ;;  %v3005_v24 = vpop.permute.xlu2 %1315 }
 0x128   : > { %v1678_v61 = vpop.f32.mrf.mxu3  ;;  %969 = vmatpush.bf16.msrb.mxu1 %v946_v40  ;;  %v2955_v40 = vpop.permute.xlu0 %1305 }
 0x129   : > { %v2929_v54 = vadd.f32 %v2836_v13, %v1678_v61  ;;  %v2934_v57 = vpop.f32.mrf.mxu0 }
 0x12b   : > { %1707 = vst.msk [vmem:[%s2842_s13 + $0x40] sm:$0xff] %vm1698_vm1, %v2929_v54  ;;  %v1739_v58 = vsel %vm1698_vm1, %v2929_v54, -inf }
 0x12c   : > { %1740 = vmax.xlane.f32.xlu2 %v1739_v58  ;;  %v882_v58 = vcvt.s32.f32 %v850_v17  ;;  %v3022_v17 = vpop.permute.xlu2 %1330 }
 0x130   : > { %v1680_v49 = vpop.f32.mrf.mxu3  ;;  %v2973_v37 = vpop.permute.xlu0 %1320 }
 0x131   : > { %v2944_v51 = vadd.f32 %v2836_v13, %v1680_v49  ;;  %v2946_v63 = vpop.f32.mrf.mxu0  ;;  %v884_v49 = vcvt.s32.f32 %v852_v16 }
 0x133   : > { %1708 = vst.msk [vmem:[%s2842_s13 + $0x48] sm:$0xff] %vm1698_vm1, %v2944_v51  ;;  %v1742_v33 = vsel %vm1698_vm1, %v2944_v51, -inf }
 0x134   : > { %1743 = vmax.xlane.f32.xlu0 %v1742_v33  ;;  %v3010_v33 = vpop.permute.xlu1 %1325 }
 0x138   : > { %v1683_v0 = vpop.f32.mrf.mxu3  ;;  %v2990_v55 = vpop.permute.xlu0 %1335 }
 0x139   : > { %v2958_v27 = vadd.f32 %v2836_v13, %v1683_v0  ;;  %v2960_v29 = vpop.f32.mrf.mxu0 }
 0x13b   : > { %1709 = vst.msk [vmem:[%s2842_s13 + $0x50] sm:$0xff] %vm1698_vm1, %v2958_v27  ;;  %v1745_v42 = vsel %vm1698_vm1, %v2958_v27, -inf }
 0x13c   : > { %1746 = vmax.xlane.f32.xlu1 %v1745_v42 }
 0x140   : > { %v1685_v32 = vpop.f32.mrf.mxu3  ;;  %v3014_v42 = vpop.permute.xlu0 %1350 }
 0x141   : > { %v2971_v34 = vadd.f32 %v2836_v13, %v1685_v32  ;;  %v817_v39 = vpop.f32.mrf.mxu0  ;;  %v914_v32 = vpack.c.bf16 %v884_v49, %v882_v58  ;;  %v3026_v58 = vpop.permute.xlu1 %1340 }
 0x143   : > { %1710 = vst.msk [vmem:[%s2842_s13 + $0x58] sm:$0xff] %vm1698_vm1, %v2971_v34  ;;  %v1748_v9 = vsel %vm1698_vm1, %v2971_v34, -inf  ;;  %970 = vmatmul.bf16.vlgmr.msrb.gmra.mxu1 %v914_v32 }
 0x144   : > { %1749 = vmax.xlane.f32.xlu2 %v1748_v9 }
 0x148   : > { %v1688_v44 = vpop.f32.mrf.mxu3 }
 0x149   : > { %v2983_v48 = vadd.f32 %v2836_v13, %v1688_v44  ;;  %v819_v53 = vpop.f32.mrf.mxu0 }
 0x14a   : > { %v957_v49 = vpack.c.bf16 %v819_v53, %v817_v39 }
 0x14b   : > { %1711 = vst.msk [vmem:[%s2842_s13 + $0x60] sm:$0xff] %vm1698_vm1, %v2983_v48  ;;  %v1751_v60 = vsel %vm1698_vm1, %v2983_v48, -inf }
 0x14c   : > { %1752 = vmax.xlane.f32.xlu0 %v1751_v60 }
 0x150   : > { %v1690_v14 = vpop.f32.mrf.mxu3 }
 0x151   : > { %v3003_v5 = vadd.f32 %v2836_v13, %v1690_v14  ;;  %v822_v61 = vpop.f32.mrf.mxu0 }
 0x153   : > { %3572 = vst [vmem:[#allocation4_spill] sm:$0xff] %v3003_v5  ;;  %v1754_v0 = vsel %vm1698_vm1, %v3003_v5, -inf }
 0x154   : > { %1712 = vst.msk [vmem:[%s2842_s13 + $0x68] sm:$0xff] %vm1698_vm1, %v3003_v5  ;;  %1755 = vmax.xlane.f32.xlu1 %v1754_v0  ;;  %v856_v5 = vunpack.c.3.s8 %v842_v12  ;;  %v3043_v12 = vpop.permute.xlu2 %1345 }
 0x156   : > { %v888_v43 = vcvt.s32.f32 %v856_v5 }
 0x158   : > { %v1693_v44 = vpop.f32.mrf.mxu3 }
 0x159   : > { %v3017_v60 = vadd.f32 %v2836_v13, %v1693_v44  ;;  %v824_v9 = vpop.f32.mrf.mxu0 }
 0x15a   : > { %v958_v14 = vpack.c.bf16 %v824_v9, %v822_v61  ;;  %v843_v9 = vld [vmem:[%s2999_s16 + $0x8] sm:$0xff] }
 0x15b   : > { %3573 = vst [vmem:[#allocation5_spill] sm:$0xff] %v3017_v60  ;;  %v1757_v16 = vsel %vm1698_vm1, %v3017_v60, -inf  ;;  %v851_v39 = vunpack.c.0.s8 %v843_v9 }
 0x15c   : > { %1713 = vst.msk [vmem:[%s2842_s13 + $0x70] sm:$0xff] %vm1698_vm1, %v3017_v60  ;;  %1758 = vmax.xlane.f32.xlu2 %v1757_v16  ;;  %1014 = vmatpush.bf16.msra.mxu2 %v958_v14  ;;  %v886_v16 = vcvt.s32.f32 %v854_v11  ;;  %v956_v14 = vpack.c.bf16 %v2960_v29, %v2946_v63  ;;  %v955_v11 = vpack.c.bf16 %v2934_v57, %v2916_v23 }
 0x15d   : > { %v883_v5 = vcvt.s32.f32 %v851_v39 }
 0x15e   : > { %v916_v53 = vpack.c.bf16 %v888_v43, %v886_v16  ;;  %v3575_v16 = vpack.c.bf16 %v2898_v20, %v2887_v6  ;;  %v857_v20 = vunpack.c.3.s8 %v843_v9 }
 0x15f   : > { %v1717_v0 = vpop.xlane.xlu0 %1716 }
 0x160   : > { %v3029_v32 = vsub.f32 %v2845_v15, %v1717_v0  ;;  %v1695_v44 = vpop.f32.mrf.mxu3  ;;  %1015 = vmatpush.bf16.msra.mxu2 %v957_v49  ;;  %975 = vmatmul.bf16.gmra.mxu1 %v916_v53 }
 0x161   : > { %v3032_v61 = vadd.f32 %v2836_v13, %v1695_v44  ;;  %v853_v13 = vunpack.c.1.s8 %v843_v9 }
 0x162   : > { %v1779_v60 = vmul.f32 1.442695, %v3029_v32 }
 0x163   : > { %3574 = vst [vmem:[#allocation6_spill] sm:$0xff] %v3032_v61  ;;  %v1760_v15 = vsel %vm1698_vm1, %v3032_v61, -inf  ;;  %v885_v49 = vcvt.s32.f32 %v853_v13 }
 0x164   : > { %1714 = vst.msk [vmem:[%s2842_s13 + $0x78] sm:$0xff] %vm1698_vm1, %v3032_v61  ;;  %2376 = vpow2.f32 %v1779_v60  ;;  %1761 = vmax.xlane.f32.xlu0 %v1760_v15  ;;  %1016 = vmatpush.bf16.msra.mxu2 %v956_v14 }
 0x165   : > { %v915_v44 = vpack.c.bf16 %v885_v49, %v883_v5 }
 0x167   : > { %v1720_v63 = vpop.xlane.xlu1 %1719 }
 0x168   : > { %v3048_v29 = vsub.f32 %v2853_v22, %v1720_v63  ;;  %1017 = vmatpush.bf16.msra.mxu2 %v955_v11  ;;  %v844_v22 = vld [vmem:[%s2999_s16 + $0x10] sm:$0xff] }
 0x169   : > { %v858_v14 = vunpack.c.0.s8 %v844_v22  ;;  %v860_v15 = vunpack.c.1.s8 %v844_v22 }
 0x16a   : > { %v2377_v60 = vpop.eup %2376  ;;  %v1781_v0 = vmul.f32 1.442695, %v3048_v29 }
 0x16b   : > { %v1811_v43 = vsel %vm1698_vm1, %v2377_v60, 0.0  ;;  %v890_v53 = vcvt.s32.f32 %v858_v14  ;;  %v892_v11 = vcvt.s32.f32 %v860_v15  ;;  %v889_v60 = vcvt.s32.f32 %v857_v20  ;;  %v845_v15 = vld [vmem:[%s2999_s16 + $0x18] sm:$0xff] }
 0x16c   : > { %2378 = vpow2.f32 %v1781_v0  ;;  %1812 = vadd.xlane.f32.xlu0 %v1811_v43  ;;  %1018 = vmatpush.bf16.msra.mxu2 %v3575_v16  ;;  %v864_v14 = vunpack.c.3.s8 %v844_v22 }
 0x16d   : > { %v918_v63 = vpack.c.bf16 %v892_v11, %v890_v53 }
 0x16e   : > { %v896_v53 = vcvt.s32.f32 %v864_v14 }
 0x16f   : > { %v1723_v23 = vpop.xlane.xlu2 %1722  ;;  %1019 = vmatmul.bf16.vlgmr.msra.gmra.mxu2 %v915_v44 }
 0x170   : > { %1198 = vmatpush.bf16.msrb.mxu2 %v2621_v1  ;;  %v3058_v57 = vsub.f32 %v2861_v28, %v1723_v23  ;;  %v855_v1 = vunpack.c.2.s8 %v843_v9  ;;  %980 = vmatmul.bf16.gmra.mxu1 %v918_v63  ;;  %v862_v23 = vunpack.c.2.s8 %v844_v22 }
 0x172   : > { %v2379_v39 = vpop.eup %2378  ;;  %v1783_v13 = vmul.f32 1.442695, %v3058_v57  ;;  %v887_v49 = vcvt.s32.f32 %v855_v1  ;;  %v861_v1 = vunpack.c.1.s8 %v845_v15 }
 0x173   : > { %v1814_v6 = vsel %vm1698_vm1, %v2379_v39, 0.0 }
 0x174   : > { %1199 = vmatpush.bf16.msrb.mxu2 %v2631_v3  ;;  %2380 = vpow2.f32 %v1783_v13  ;;  %1815 = vadd.xlane.f32.xlu1 %v1814_v6  ;;  %v917_v44 = vpack.c.bf16 %v889_v60, %v887_v49  ;;  %v894_v13 = vcvt.s32.f32 %v862_v23  ;;  %v859_v6 = vunpack.c.0.s8 %v845_v15 }
 0x176   : > { %v920_v20 = vpack.c.bf16 %v896_v53, %v894_v13  ;;  %v891_v22 = vcvt.s32.f32 %v859_v6  ;;  %v865_v6 = vunpack.c.3.s8 %v845_v15 }
 0x177   : > { %v1726_v28 = vpop.xlane.xlu0 %1725 }
 0x178   : > { %v3064_v5 = vsub.f32 %v2869_v36, %v1726_v28  ;;  %v893_v28 = vcvt.s32.f32 %v861_v1 }
 0x17a   : > { %v2381_v0 = vpop.eup %2380  ;;  %v1785_v43 = vmul.f32 1.442695, %v3064_v5 }
 0x17b   : > { %v1817_v3 = vsel %vm1698_vm1, %v2381_v0, 0.0 }
 0x17c   : > { %2382 = vpow2.f32 %v1785_v43  ;;  %1818 = vadd.xlane.f32.xlu2 %v1817_v3  ;;  %v919_v43 = vpack.c.bf16 %v893_v28, %v891_v22  ;;  %v897_v22 = vcvt.s32.f32 %v865_v6 }
 0x17f   : > { %v1729_v16 = vpop.xlane.xlu1 %1728  ;;  %1024 = vmatmul.bf16.gmra.mxu2 %v917_v44  ;;  %v846_v44 = vld [vmem:[%s2999_s16 + $0x20] sm:$0xff] }
 0x180   : > { %v3069_v9 = vsub.f32 %v2877_v46, %v1729_v16  ;;  %985 = vmatmul.bf16.gmra.mxu1 %v920_v20  ;;  %v866_v23 = vunpack.c.0.s8 %v846_v44  ;;  %v868_v14 = vunpack.c.1.s8 %v846_v44 }
 0x182   : > { %v2383_v36 = vpop.eup %2382  ;;  %v1787_v39 = vmul.f32 1.442695, %v3069_v9  ;;  %v900_v13 = vcvt.s32.f32 %v868_v14  ;;  %v847_v14 = vld [vmem:[%s2999_s16 + $0x28] sm:$0xff] }
 0x183   : > { %v1820_v11 = vsel %vm1698_vm1, %v2383_v36, 0.0 }
 0x184   : > { %2384 = vpow2.f32 %v1787_v39  ;;  %1821 = vadd.xlane.f32.xlu0 %v1820_v11  ;;  %v898_v39 = vcvt.s32.f32 %v866_v23  ;;  %v863_v11 = vunpack.c.2.s8 %v845_v15  ;;  %v872_v23 = vunpack.c.3.s8 %v846_v44 }
 0x186   : > { %v922_v1 = vpack.c.bf16 %v900_v13, %v898_v39  ;;  %v904_v39 = vcvt.s32.f32 %v872_v23 }
 0x187   : > { %v1732_v46 = vpop.xlane.xlu2 %1731 }
 0x188   : > { %v3075_v63 = vsub.f32 %v2885_v4, %v1732_v46  ;;  %v895_v46 = vcvt.s32.f32 %v863_v11  ;;  %v869_v11 = vunpack.c.1.s8 %v847_v14 }
 0x18a   : > { %v2385_v49 = vpop.eup %2384  ;;  %v1789_v60 = vmul.f32 1.442695, %v3075_v63 }
 0x18b   : > { %v1823_v0 = vsel %vm1698_vm1, %v2385_v49, 0.0 }
 0x18c   : > { %2386 = vpow2.f32 %v1789_v60  ;;  %1824 = vadd.xlane.f32.xlu1 %v1823_v0  ;;  %v921_v0 = vpack.c.bf16 %v897_v22, %v895_v46  ;;  %v848_v22 = vld [vmem:[%s2999_s16 + $0x30] sm:$0xff] }
 0x18f   : > { %v1735_v3 = vpop.xlane.xlu0 %1734  ;;  %1029 = vmatmul.bf16.gmra.mxu2 %v919_v43 }
 0x190   : > { %v3081_v16 = vsub.f32 %v2896_v19, %v1735_v3  ;;  %990 = vmatmul.bf16.gmra.mxu1 %v922_v1  ;;  %v870_v3 = vunpack.c.2.s8 %v846_v44  ;;  %v901_v1 = vcvt.s32.f32 %v869_v11 }
 0x192   : > { %v2387_v4 = vpop.eup %2386  ;;  %v1791_v36 = vmul.f32 1.442695, %v3081_v16 }
 0x193   : > { %v1826_v53 = vsel %vm1698_vm1, %v2387_v4, 0.0 }
 0x194   : > { %2388 = vpow2.f32 %v1791_v36  ;;  %1827 = vadd.xlane.f32.xlu2 %v1826_v53  ;;  %v902_v36 = vcvt.s32.f32 %v870_v3  ;;  %v867_v53 = vunpack.c.0.s8 %v847_v14  ;;  %v873_v3 = vunpack.c.3.s8 %v847_v14 }
 0x196   : > { %v924_v6 = vpack.c.bf16 %v904_v39, %v902_v36  ;;  %v878_v39 = vunpack.c.2.s8 %v848_v22 }
 0x197   : > { %v1738_v20 = vpop.xlane.xlu1 %1737 }
 0x198   : > { %v3086_v19 = vsub.f32 %v2911_v8, %v1738_v20  ;;  %v910_v11 = vcvt.s32.f32 %v878_v39 }
 0x19a   : > { %v2389_v28 = vpop.eup %2388  ;;  %v1793_v49 = vmul.f32 1.442695, %v3086_v19 }
 0x19b   : > { %v1829_v60 = vsel %vm1698_vm1, %v2389_v28, 0.0  ;;  %v874_v28 = vunpack.c.0.s8 %v848_v22 }
 0x19c   : > { %2390 = vpow2.f32 %v1793_v49  ;;  %1830 = vadd.xlane.f32.xlu0 %v1829_v60  ;;  %v876_v49 = vunpack.c.1.s8 %v848_v22 }
 0x19d   : > { %v906_v60 = vcvt.s32.f32 %v874_v28 }
 0x19f   : > { %v1741_v43 = vpop.xlane.xlu2 %1740  ;;  %1034 = vmatmul.bf16.gmra.mxu2 %v921_v0  ;;  %v908_v0 = vcvt.s32.f32 %v876_v49 }
 0x1a0   : > { %v3091_v15 = vsub.f32 %v2929_v54, %v1741_v43  ;;  %995 = vmatmul.bf16.gmra.mxu1 %v924_v6  ;;  %v899_v54 = vcvt.s32.f32 %v867_v53  ;;  %v871_v43 = vunpack.c.2.s8 %v847_v14  ;;  %v849_v53 = vld [vmem:[%s2999_s16 + $0x38] sm:$0xff] }
 0x1a1   : > { %v926_v23 = vpack.c.bf16 %v908_v0, %v906_v60  ;;  %v2529_v60 = vmov 0.0  }
 0x1a2   : > { %v2391_v8 = vpop.eup %2390  ;;  %v1795_v4 = vmul.f32 1.442695, %v3091_v15  ;;  %v923_v46 = vpack.c.bf16 %v901_v1, %v899_v54  ;;  %v875_v1 = vunpack.c.0.s8 %v849_v53  ;;  %560 = vst.msk [vmem:[#allocation2] sm:$0xff] %vm559_vm2, %v2529_v60 }
 0x1a3   : > { %v1832_v13 = vsel %vm1698_vm1, %v2391_v8, 0.0  ;;  %v903_v8 = vcvt.s32.f32 %v871_v43  ;;  %561 = vst.msk [vmem:[#allocation2 + $0x8] sm:$0xff] %vm559_vm2, %v2529_v60  ;;  %v879_v43 = vunpack.c.2.s8 %v849_v53 }
 0x1a4   : > { %2392 = vpow2.f32 %v1795_v4  ;;  %1833 = vadd.xlane.f32.xlu1 %v1832_v13  ;;  %v905_v4 = vcvt.s32.f32 %v873_v3  ;;  %v880_v13 = vunpack.c.3.s8 %v848_v22  ;;  %562 = vst.msk [vmem:[#allocation2 + $0x10] sm:$0xff] %vm559_vm2, %v2529_v60  ;;  %v881_v3 = vunpack.c.3.s8 %v849_v53 }
 0x1a5   : > { %563 = vst.msk [vmem:[#allocation2 + $0x18] sm:$0xff] %vm559_vm2, %v2529_v60 }
 0x1a6   : > { %v925_v36 = vpack.c.bf16 %v905_v4, %v903_v8  ;;  %v912_v6 = vcvt.s32.f32 %v880_v13  ;;  %564 = vst.msk [vmem:[#allocation2 + $0x20] sm:$0xff] %vm559_vm2, %v2529_v60  ;;  %v911_v8 = vcvt.s32.f32 %v879_v43  ;;  %v913_v4 = vcvt.s32.f32 %v881_v3 }
 0x1a7   : > { %v3099_v54 = vpop.xlane.xlu0 %1743  ;;  %565 = vst.msk [vmem:[#allocation2 + $0x28] sm:$0xff] %vm559_vm2, %v2529_v60 }
 0x1a8   : > { %566 = vst.msk [vmem:[#allocation2 + $0x30] sm:$0xff] %vm559_vm2, %v2529_v60  ;;  %v929_v39 = vpack.c.bf16 %v913_v4, %v911_v8 }
 0x1a9   : > { %567 = vst.msk [vmem:[#allocation2 + $0x38] sm:$0xff] %vm559_vm2, %v2529_v60  ;;  %v930_v4 = vld [vmem:[#allocation2] sm:$0xff] }
 0x1aa   : > { %v2393_v20 = vpop.eup %2392  ;;  %568 = vst.msk [vmem:[#allocation2 + $0x40] sm:$0xff] %vm559_vm2, %v2529_v60 }
 0x1ab   : > { %v1835_v44 = vsel %vm1698_vm1, %v2393_v20, 0.0  ;;  %v877_v20 = vunpack.c.1.s8 %v849_v53  ;;  %569 = vst.msk [vmem:[#allocation2 + $0x48] sm:$0xff] %vm559_vm2, %v2529_v60 }
 0x1ac   : > { %1836 = vadd.xlane.f32.xlu2 %v1835_v44  ;;  %v928_v44 = vpack.c.bf16 %v912_v6, %v910_v11  ;;  %570 = vst.msk [vmem:[#allocation2 + $0x50] sm:$0xff] %vm559_vm2, %v2529_v60 }
 0x1ad   : > { %v909_v28 = vcvt.s32.f32 %v877_v20  ;;  %571 = vst.msk [vmem:[#allocation2 + $0x58] sm:$0xff] %vm559_vm2, %v2529_v60 }
 0x1ae   : > { %572 = vst.msk [vmem:[#allocation2 + $0x60] sm:$0xff] %vm559_vm2, %v2529_v60 }
 0x1af   : > { %1039 = vmatmul.bf16.gmra.mxu2 %v923_v46  ;;  %v907_v46 = vcvt.s32.f32 %v875_v1  ;;  %v3108_v22 = vpop.xlane.xlu1 %1746  ;;  %573 = vst.msk [vmem:[#allocation2 + $0x68] sm:$0xff] %vm559_vm2, %v2529_v60 }
 0x1b0   : > { %1000 = vmatmul.bf16.gmra.mxu1 %v926_v23  ;;  %574 = vst.msk [vmem:[#allocation2 + $0x70] sm:$0xff] %vm559_vm2, %v2529_v60 }
 0x1b1   : > { %v927_v14 = vpack.c.bf16 %v909_v28, %v907_v46  ;;  %575 = vst.msk [vmem:[#allocation2 + $0x78] sm:$0xff] %vm559_vm2, %v2529_v60 }
 0x1bf   : > { %1044 = vmatmul.bf16.gmra.mxu2 %v925_v36  ;;  %v3101_v49 = vpop.xlane.xlu0 %1752  ;;  %v3120_v36 = vpop.xlane.xlu2 %1749 }
 0x1c0   : > { %1005 = vmatmul.bf16.gmra.mxu1 %v928_v44  ;;  %v971_v0 = vpop.f32.mrf.mxu1 }
 0x1c7   : > { %v3124_v13 = vpop.xlane.xlu1 %1755 }
 0x1c8   : > { %v973_v53 = vpop.f32.mrf.mxu1 }
 0x1cf   : > { %1049 = vmatmul.bf16.gmra.mxu2 %v927_v14  ;;  %v3127_v6 = vpop.xlane.xlu2 %1758 }
 0x1d7   : > { %v3114_v23 = vpop.xlane.xlu0 %1761 }
 0x1dd   : > { %v976_v46 = vpop.f32.mrf.mxu1 }
 0x1df   : > { %v1813_v11 = vpop.xlane.xlu0 %1812  ;;  %1054 = vmatmul.bf16.gmra.mxu2 %v929_v39 }
 0x1e0   : > { %2394 = vlog2.f32 %v1813_v11 }
 0x1e5   : > { %v978_v8 = vpop.f32.mrf.mxu1 }
 0x1e6   : > { %v2395_v1 = vpop.eup %2394 }
 0x1e7   : > { %v1860_v20 = vmul.f32 0.6931472, %v2395_v1  ;;  %v1816_v44 = vpop.xlane.xlu1 %1815 }
 0x1e8   : > { %2396 = vlog2.f32 %v1816_v44 }
 0x1e9   : > { %v1891_v28 = vsub.f32 %v3029_v32, %v1860_v20 }
 0x1eb   : > { %1907 = vst.msk [vmem:[%s3133_s20] sm:$0xff] %vm1698_vm1, %v1891_v28 }
 0x1ee   : > { %v2397_v14 = vpop.eup %2396 }
 0x1ef   : > { %v1862_v60 = vmul.f32 0.6931472, %v2397_v14  ;;  %v1819_v43 = vpop.xlane.xlu2 %1818  ;;  %2284 = vmatmul.msk.bf16.vlgmr.msrb.gmra.mxu2 %vm704_vm0, %v2701_v18  ;;  %v931_v18 = vld [vmem:[#allocation2 + $0x8] sm:$0xff]  ;;  %v981_v14 = vpop.f32.mrf.mxu1 }
 0x1f0   : > { %2398 = vlog2.f32 %v1819_v43 }
 0x1f1   : > { %v1892_v3 = vsub.f32 %v3048_v29, %v1862_v60 }
 0x1f2   : > { %v1020_v39 = vpop.f32.mrf.mxu2 }
 0x1f3   : > { %1908 = vst.msk [vmem:[%s3133_s20 + $0x8] sm:$0xff] %vm1698_vm1, %v1892_v3  ;;  %v1021_v11 = vadd.f32 %v1020_v39, %v971_v0 }
 0x1f5   : > { %v1060_v32 = vadd.f32 %v1021_v11, %v930_v4 }
 0x1f6   : > { %v2399_v1 = vpop.eup %2398 }
 0x1f7   : > { %v1864_v20 = vmul.f32 0.6931472, %v2399_v1  ;;  %v1822_v44 = vpop.xlane.xlu0 %1821  ;;  %1077 = vst.msk [vmem:[#allocation2] sm:$0xff] %vm559_vm2, %v1060_v32  ;;  %v983_v1 = vpop.f32.mrf.mxu1 }
 0x1f8   : > { %2400 = vlog2.f32 %v1822_v44 }
 0x1f9   : > { %v1893_v28 = vsub.f32 %v3058_v57, %v1864_v20  ;;  %v932_v57 = vld [vmem:[#allocation2 + $0x10] sm:$0xff] }
 0x1fa   : > { %v1022_v29 = vpop.f32.mrf.mxu2 }
 0x1fb   : > { %1909 = vst.msk [vmem:[%s3133_s20 + $0x10] sm:$0xff] %vm1698_vm1, %v1893_v28  ;;  %v1023_v60 = vadd.f32 %v1022_v29, %v973_v53 }
 0x1fd   : > { %v1061_v3 = vadd.f32 %v1023_v60, %v931_v18 }
 0x1fe   : > { %v2401_v43 = vpop.eup %2400 }
 0x1ff   : > { %v1866_v61 = vmul.f32 0.6931472, %v2401_v43  ;;  %v1825_v0 = vpop.xlane.xlu1 %1824  ;;  %1078 = vst.msk [vmem:[#allocation2 + $0x8] sm:$0xff] %vm559_vm2, %v1061_v3  ;;  %2285 = vmatmul.msk.bf16.gmra.mxu2 %vm704_vm0, %v2714_v21  ;;  %v933_v21 = vld [vmem:[#allocation2 + $0x18] sm:$0xff]  ;;  %v986_v43 = vpop.f32.mrf.mxu1 }
 0x200   : > { %2402 = vlog2.f32 %v1825_v0 }
 0x201   : > { %v1894_v4 = vsub.f32 %v3064_v5, %v1866_v61 }
 0x202   : > { %v1025_v39 = vpop.f32.mrf.mxu2 }
 0x203   : > { %1910 = vst.msk [vmem:[%s3133_s20 + $0x18] sm:$0xff] %vm1698_vm1, %v1894_v4  ;;  %v1026_v11 = vadd.f32 %v1025_v39, %v976_v46 }
 0x205   : > { %v1062_v32 = vadd.f32 %v1026_v11, %v932_v57 }
 0x206   : > { %v2403_v53 = vpop.eup %2402 }
 0x207   : > { %v1868_v20 = vmul.f32 0.6931472, %v2403_v53  ;;  %v1828_v44 = vpop.xlane.xlu2 %1827  ;;  %1079 = vst.msk [vmem:[#allocation2 + $0x10] sm:$0xff] %vm559_vm2, %v1062_v32  ;;  %v988_v32 = vpop.f32.mrf.mxu1 }
 0x208   : > { %2404 = vlog2.f32 %v1828_v44 }
 0x209   : > { %v1895_v28 = vsub.f32 %v3069_v9, %v1868_v20  ;;  %v934_v9 = vld [vmem:[#allocation2 + $0x20] sm:$0xff] }
 0x20a   : > { %v1027_v61 = vpop.f32.mrf.mxu2 }
 0x20b   : > { %1911 = vst.msk [vmem:[%s3133_s20 + $0x20] sm:$0xff] %vm1698_vm1, %v1895_v28  ;;  %v1028_v5 = vadd.f32 %v1027_v61, %v978_v8 }
 0x20d   : > { %v1063_v29 = vadd.f32 %v1028_v5, %v933_v21  ;;  %v936_v5 = vld [vmem:[#allocation2 + $0x30] sm:$0xff] }
 0x20e   : > { %v2405_v18 = vpop.eup %2404 }
 0x20f   : > { %v1870_v60 = vmul.f32 0.6931472, %v2405_v18  ;;  %v1831_v46 = vpop.xlane.xlu0 %1830  ;;  %1080 = vst.msk [vmem:[#allocation2 + $0x18] sm:$0xff] %vm559_vm2, %v1063_v29  ;;  %2286 = vmatmul.msk.bf16.gmra.mxu2 %vm704_vm0, %v2737_v26  ;;  %v935_v26 = vld [vmem:[#allocation2 + $0x28] sm:$0xff]  ;;  %v991_v18 = vpop.f32.mrf.mxu1 }
 0x210   : > { %2406 = vlog2.f32 %v1831_v46 }
 0x211   : > { %v1896_v3 = vsub.f32 %v3075_v63, %v1870_v60 }
 0x212   : > { %v1030_v0 = vpop.f32.mrf.mxu2 }
 0x213   : > { %1912 = vst.msk [vmem:[%s3133_s20 + $0x28] sm:$0xff] %vm1698_vm1, %v1896_v3  ;;  %v1031_v4 = vadd.f32 %v1030_v0, %v981_v14 }
 0x215   : > { %v1064_v57 = vadd.f32 %v1031_v4, %v934_v9  ;;  %v937_v9 = vld [vmem:[#allocation2 + $0x38] sm:$0xff] }
 0x216   : > { %v2407_v8 = vpop.eup %2406 }
 0x217   : > { %v1872_v39 = vmul.f32 0.6931472, %v2407_v8  ;;  %v1834_v11 = vpop.xlane.xlu1 %1833  ;;  %1081 = vst.msk [vmem:[#allocation2 + $0x20] sm:$0xff] %vm559_vm2, %v1064_v57 }
 0x218   : > { %2408 = vlog2.f32 %v1834_v11 }
 0x219   : > { %v1897_v53 = vsub.f32 %v3081_v16, %v1872_v39  ;;  %v3180_v39 = vld [vmem:[%s3560_s5] ss:$0 sm:$0xff] }
 0x21a   : > { %v1032_v63 = vpop.f32.mrf.mxu2 }
 0x21b   : > { %1913 = vst.msk [vmem:[%s3133_s20 + $0x30] sm:$0xff] %vm1698_vm1, %v1897_v53  ;;  %v1033_v20 = vadd.f32 %v1032_v63, %v983_v1 }
 0x21d   : > { %v1065_v28 = vadd.f32 %v1033_v20, %v935_v26 }
 0x21e   : > { %v2409_v44 = vpop.eup %2408 }
 0x21f   : > { %v1874_v14 = vmul.f32 0.6931472, %v2409_v44  ;;  %v1837_v21 = vpop.xlane.xlu2 %1836  ;;  %1082 = vst.msk [vmem:[#allocation2 + $0x28] sm:$0xff] %vm559_vm2, %v1065_v28 }
 0x220   : > { %2410 = vlog2.f32 %v1837_v21 }
 0x221   : > { %v1898_v61 = vsub.f32 %v3086_v19, %v1874_v14  ;;  %v993_v19 = vpop.f32.mrf.mxu1  ;;  %v939_v14 = vld [vmem:[#allocation2 + $0x48] sm:$0xff] }
 0x222   : > { %v1035_v16 = vpop.f32.mrf.mxu2 }
 0x223   : > { %1914 = vst.msk [vmem:[%s3133_s20 + $0x38] sm:$0xff] %vm1698_vm1, %v1898_v61  ;;  %v1036_v29 = vadd.f32 %v1035_v16, %v986_v43 }
 0x225   : > { %v1066_v46 = vadd.f32 %v1036_v29, %v936_v5 }
 0x226   : > { %v2411_v60 = vpop.eup %2410 }
 0x227   : > { %v1876_v3 = vmul.f32 0.6931472, %v2411_v60  ;;  %1083 = vst.msk [vmem:[#allocation2 + $0x30] sm:$0xff] %vm559_vm2, %v1066_v46  ;;  %v940_v46 = vld [vmem:[#allocation2 + $0x50] sm:$0xff] }
 0x229   : > { %v1899_v1 = vsub.f32 %v3091_v15, %v1876_v3  ;;  %v938_v15 = vld [vmem:[#allocation2 + $0x40] sm:$0xff]  ;;  %v996_v20 = vpop.f32.mrf.mxu1 }
 0x22a   : > { %v1037_v0 = vpop.f32.mrf.mxu2 }
 0x22b   : > { %1915 = vst.msk [vmem:[%s3133_s20 + $0x40] sm:$0xff] %vm1698_vm1, %v1899_v1  ;;  %v1038_v4 = vadd.f32 %v1037_v0, %v988_v32 }
 0x22d   : > { %v1067_v8 = vadd.f32 %v1038_v4, %v937_v9 }
 0x22e   : > { %v1247_v57 = vld [vmem:[#allocation2 + $0x30] sm:$0xff] }
 0x22f   : > { %1084 = vst.msk [vmem:[#allocation2 + $0x38] sm:$0xff] %vm559_vm2, %v1067_v8  ;;  %v1359_v43 = vmul.f32 %v2955_v40, %v1247_v57  ;;  %v941_v8 = vld [vmem:[#allocation2 + $0x58] sm:$0xff] }
 0x231   : > { %v1375_v11 = vadd.f32 %v1359_v43, %v2756_v35 }
 0x232   : > { %v1040_v53 = vpop.f32.mrf.mxu2 }
 0x233   : > { %v1041_v32 = vadd.f32 %v1040_v53, %v991_v18  ;;  %v3190_v26 = vadd.f32 %v3180_v39, %v1375_v11 }
 0x235   : > { %v1068_v40 = vadd.f32 %v1041_v32, %v938_v15  ;;  %v1439_v63 = vsel %vm559_vm2, %v3190_v26, -inf  ;;  %1411 = vst.msk [vmem:[%s3187_s30 + $0x30] sm:$0xff] %vm559_vm2, %v3190_v26 }
 0x236   : > { %1440 = vmax.xlane.f32.xlu0 %v1439_v63  ;;  %v1248_v35 = vld [vmem:[#allocation2 + $0x38] sm:$0xff]  ;;  %v942_v63 = vld [vmem:[#allocation2 + $0x60] sm:$0xff] }
 0x237   : > { %1085 = vst.msk [vmem:[#allocation2 + $0x40] sm:$0xff] %vm559_vm2, %v1068_v40  ;;  %v1360_v44 = vmul.f32 %v2985_v50, %v1248_v35  ;;  %v998_v50 = vpop.f32.mrf.mxu1 }
 0x239   : > { %v1376_v28 = vadd.f32 %v1360_v44, %v2765_v41 }
 0x23a   : > { %v1042_v21 = vpop.f32.mrf.mxu2 }
 0x23b   : > { %v1043_v61 = vadd.f32 %v1042_v21, %v993_v19  ;;  %v3201_v5 = vadd.f32 %v3180_v39, %v1376_v28 }
 0x23d   : > { %v1069_v16 = vadd.f32 %v1043_v61, %v939_v14  ;;  %v1442_v18 = vsel %vm559_vm2, %v3201_v5, -inf  ;;  %1412 = vst.msk [vmem:[%s3187_s30 + $0x38] sm:$0xff] %vm559_vm2, %v3201_v5 }
 0x23e   : > { %1443 = vmax.xlane.f32.xlu1 %v1442_v18  ;;  %v1249_v29 = vld [vmem:[#allocation2 + $0x40] sm:$0xff] }
 0x23f   : > { %1086 = vst.msk [vmem:[#allocation2 + $0x48] sm:$0xff] %vm559_vm2, %v1069_v16  ;;  %v1361_v41 = vmul.f32 %v3005_v24, %v1249_v29  ;;  %v1001_v43 = vpop.f32.mrf.mxu1  ;;  %v943_v16 = vld [vmem:[#allocation2 + $0x68] sm:$0xff] }
 0x241   : > { %v1377_v60 = vadd.f32 %v1361_v41, %v2778_v47 }
 0x242   : > { %v1045_v3 = vpop.f32.mrf.mxu2 }
 0x243   : > { %v1046_v1 = vadd.f32 %v1045_v3, %v996_v20  ;;  %v3212_v9 = vadd.f32 %v3180_v39, %v1377_v60 }
 0x245   : > { %v1070_v0 = vadd.f32 %v1046_v1, %v940_v46  ;;  %v1445_v4 = vsel %vm559_vm2, %v3212_v9, -inf  ;;  %1413 = vst.msk [vmem:[%s3187_s30 + $0x40] sm:$0xff] %vm559_vm2, %v3212_v9  ;;  %v944_v1 = vld [vmem:[#allocation2 + $0x70] sm:$0xff] }
 0x246   : > { %1446 = vmax.xlane.f32.xlu2 %v1445_v4  ;;  %v1250_v19 = vld [vmem:[#allocation2 + $0x48] sm:$0xff] }
 0x247   : > { %1087 = vst.msk [vmem:[#allocation2 + $0x50] sm:$0xff] %vm559_vm2, %v1070_v0  ;;  %v1362_v47 = vmul.f32 %v2973_v37, %v1250_v19  ;;  %v1003_v28 = vpop.f32.mrf.mxu1 }
 0x249   : > { %v1378_v24 = vadd.f32 %v1362_v47, %v2786_v52 }
 0x24a   : > { %v1047_v57 = vpop.f32.mrf.mxu2 }
 0x24b   : > { %v1048_v11 = vadd.f32 %v1047_v57, %v998_v50  ;;  %v3223_v15 = vadd.f32 %v3180_v39, %v1378_v24 }
 0x24d   : > { %v1071_v53 = vadd.f32 %v1048_v11, %v941_v8  ;;  %v1448_v32 = vsel %vm559_vm2, %v3223_v15, -inf  ;;  %1414 = vst.msk [vmem:[%s3187_s30 + $0x48] sm:$0xff] %vm559_vm2, %v3223_v15 }
 0x24e   : > { %1449 = vmax.xlane.f32.xlu0 %v1448_v32  ;;  %v1251_v40 = vld [vmem:[#allocation2 + $0x50] sm:$0xff] }
 0x24f   : > { %1088 = vst.msk [vmem:[#allocation2 + $0x58] sm:$0xff] %vm559_vm2, %v1071_v53  ;;  %v1363_v52 = vmul.f32 %v3010_v33, %v1251_v40  ;;  %v1006_v46 = vpop.f32.mrf.mxu1 }
 0x251   : > { %v1379_v37 = vadd.f32 %v1363_v52, %v2797_v56 }
 0x252   : > { %v1050_v35 = vpop.f32.mrf.mxu2 }
 0x253   : > { %v1051_v20 = vadd.f32 %v1050_v35, %v1001_v43  ;;  %v3234_v44 = vadd.f32 %v3180_v39, %v1379_v37  ;;  %v945_v43 = vld [vmem:[#allocation2 + $0x78] sm:$0xff] }
 0x255   : > { %v1072_v14 = vadd.f32 %v1051_v20, %v942_v63  ;;  %v1451_v21 = vsel %vm559_vm2, %v3234_v44, -inf  ;;  %1415 = vst.msk [vmem:[%s3187_s30 + $0x50] sm:$0xff] %vm559_vm2, %v3234_v44 }
 0x256   : > { %1452 = vmax.xlane.f32.xlu1 %v1451_v21  ;;  %v1252_v61 = vld [vmem:[#allocation2 + $0x58] sm:$0xff] }
 0x257   : > { %1089 = vst.msk [vmem:[#allocation2 + $0x60] sm:$0xff] %vm559_vm2, %v1072_v14  ;;  %v1364_v56 = vmul.f32 %v3022_v17, %v1252_v61 }
 0x259   : > { %v1380_v33 = vadd.f32 %v1364_v56, %v2803_v59 }
 0x25a   : > { %v1052_v18 = vpop.f32.mrf.mxu2 }
 0x25b   : > { %v1053_v29 = vadd.f32 %v1052_v18, %v1003_v28  ;;  %v3245_v41 = vadd.f32 %v3180_v39, %v1380_v33 }
 0x25d   : > { %v1073_v50 = vadd.f32 %v1053_v29, %v943_v16  ;;  %v1454_v60 = vsel %vm559_vm2, %v3245_v41, -inf  ;;  %1416 = vst.msk [vmem:[%s3187_s30 + $0x58] sm:$0xff] %vm559_vm2, %v3245_v41 }
 0x25e   : > { %1455 = vmax.xlane.f32.xlu2 %v1454_v60  ;;  %v1253_v3 = vld [vmem:[#allocation2 + $0x60] sm:$0xff] }
 0x25f   : > { %1090 = vst.msk [vmem:[#allocation2 + $0x68] sm:$0xff] %vm559_vm2, %v1073_v50  ;;  %v1365_v59 = vmul.f32 %v2990_v55, %v1253_v3  ;;  %v1008_v55 = vpop.f32.mrf.mxu1 }
 0x261   : > { %v1381_v17 = vadd.f32 %v1365_v59, %v2813_v62 }
 0x262   : > { %v1055_v0 = vpop.f32.mrf.mxu2 }
 0x263   : > { %v1056_v4 = vadd.f32 %v1055_v0, %v1006_v46  ;;  %v3256_v19 = vadd.f32 %v3180_v39, %v1381_v17 }
 0x265   : > { %v1074_v47 = vadd.f32 %v1056_v4, %v944_v1  ;;  %v1457_v24 = vsel %vm559_vm2, %v3256_v19, -inf  ;;  %1417 = vst.msk [vmem:[%s3187_s30 + $0x60] sm:$0xff] %vm559_vm2, %v3256_v19 }
 0x266   : > { %1458 = vmax.xlane.f32.xlu0 %v1457_v24  ;;  %v1254_v8 = vld [vmem:[#allocation2 + $0x68] sm:$0xff]  ;;  %v1244_v24 = vld [vmem:[#allocation2 + $0x18] sm:$0xff] }
 0x267   : > { %1091 = vst.msk [vmem:[#allocation2 + $0x70] sm:$0xff] %vm559_vm2, %v1074_v47  ;;  %v1366_v62 = vmul.f32 %v3026_v58, %v1254_v8  ;;  %v3276_v58 = vsub.f32 %v2958_v27, %v3108_v22  ;;  %v3335_v47 = vsub.f32 %v2983_v48, %v3101_v49 }
 0x269   : > { %v1382_v57 = vadd.f32 %v1366_v62, %v2819_v2  ;;  %v1241_v2 = vld [vmem:[#allocation2] sm:$0xff]  ;;  %v1799_v28 = vmul.f32 1.442695, %v3276_v58  ;;  %v1356_v62 = vmul.f32 %v2967_v31, %v1244_v24 }
 0x26a   : > { %v1057_v11 = vpop.f32.mrf.mxu2  ;;  %v1353_v35 = vmul.f32 %v2923_v25, %v1241_v2  ;;  %v1242_v25 = vld [vmem:[#allocation2 + $0x8] sm:$0xff] }
 0x26b   : > { %v1058_v53 = vadd.f32 %v1057_v11, %v1008_v55  ;;  %v3267_v32 = vadd.f32 %v3180_v39, %v1382_v57  ;;  %2412 = vpow2.f32 %v1799_v28  ;;  %v1354_v16 = vmul.f32 %v2941_v45, %v1242_v25  ;;  %v1243_v45 = vld [vmem:[#allocation2 + $0x10] sm:$0xff]  ;;  %v1245_v11 = vld [vmem:[#allocation2 + $0x20] sm:$0xff] }
 0x26c   : > { %v1355_v17 = vmul.f32 %v2953_v38, %v1243_v45  ;;  %v1803_v55 = vmul.f32 1.442695, %v3335_v47  ;;  %v1357_v31 = vmul.f32 %v2965_v30, %v1245_v11 }
 0x26d   : > { %v1075_v40 = vadd.f32 %v1058_v53, %v945_v43  ;;  %v1460_v52 = vsel %vm559_vm2, %v3267_v32, -inf  ;;  %1418 = vst.msk [vmem:[%s3187_s30 + $0x68] sm:$0xff] %vm559_vm2, %v3267_v32 }
 0x26e   : > { %1461 = vmax.xlane.f32.xlu1 %v1460_v52  ;;  %v1255_v37 = vld [vmem:[#allocation2 + $0x70] sm:$0xff] }
 0x26f   : > { %1092 = vst.msk [vmem:[#allocation2 + $0x78] sm:$0xff] %vm559_vm2, %v1075_v40  ;;  %v1367_v63 = vmul.f32 %v3043_v12, %v1255_v37 }
 0x271   : > { %v1383_v20 = vadd.f32 %v1367_v63, %v2829_v7  ;;  %v3296_v7 = vsub.f32 %v2971_v34, %v3120_v36  ;;  %v2413_v60 = vpop.eup %2412 }
 0x272   : > { %v1201_v14 = vpop.f32.mrf.mxu2  ;;  %v1841_v3 = vsel %vm1698_vm1, %v2413_v60, 0.0 }
 0x273   : > { %v1369_v21 = vadd.f32 %v1353_v35, %v1201_v14  ;;  %v3284_v61 = vadd.f32 %v3180_v39, %v1383_v20  ;;  %v1801_v34 = vmul.f32 1.442695, %v3296_v7  ;;  %v1246_v35 = vld [vmem:[#allocation2 + $0x28] sm:$0xff]  ;;  %v3576_v14 = vld [vmem:[#allocation3_spill] sm:$0xff] }
 0x275   : > { %v3287_v27 = vadd.f32 %v3180_v39, %v1369_v21  ;;  %v1463_v22 = vsel %vm559_vm2, %v3284_v61, -inf  ;;  %1419 = vst.msk [vmem:[%s3187_s30 + $0x70] sm:$0xff] %vm559_vm2, %v3284_v61  ;;  %2414 = vpow2.f32 %v1801_v34  ;;  %v1358_v21 = vmul.f32 %v3576_v14, %v1246_v35 }
 0x276   : > { %1464 = vmax.xlane.f32.xlu2 %v1463_v22  ;;  %v1256_v12 = vld [vmem:[#allocation2 + $0x78] sm:$0xff] }
 0x277   : > { %1405 = vst.msk [vmem:[%s3187_s30] sm:$0xff] %vm559_vm2, %v3287_v27  ;;  %v1421_v56 = vsel %vm559_vm2, %v3287_v27, -inf  ;;  %v1368_v33 = vmul.f32 %v3014_v42, %v1256_v12 }
 0x278   : > { %1422 = vmax.xlane.f32.xlu1 %v1421_v56 }
 0x279   : > { %v1384_v18 = vadd.f32 %v1368_v33, %v2831_v10  ;;  %v3320_v10 = vsub.f32 %v2944_v51, %v3099_v54 }
 0x27a   : > { %v1203_v36 = vpop.f32.mrf.mxu2 }
 0x27b   : > { %v1370_v29 = vadd.f32 %v1354_v16, %v1203_v36  ;;  %v3308_v50 = vadd.f32 %v3180_v39, %v1384_v18  ;;  %v1797_v1 = vmul.f32 1.442695, %v3320_v10  ;;  %v2415_v0 = vpop.eup %2414 }
 0x27c   : > { %v1844_v38 = vsel %vm1698_vm1, %v2415_v0, 0.0 }
 0x27d   : > { %v3311_v46 = vadd.f32 %v3180_v39, %v1370_v29  ;;  %v1466_v42 = vsel %vm559_vm2, %v3308_v50, -inf  ;;  %1420 = vst.msk [vmem:[%s3187_s30 + $0x78] sm:$0xff] %vm559_vm2, %v3308_v50  ;;  %2416 = vpow2.f32 %v1797_v1 }
 0x27e   : > { %1467 = vmax.xlane.f32.xlu0 %v1466_v42  ;;  %2418 = vpow2.f32 %v1803_v55 }
 0x27f   : > { %1406 = vst.msk [vmem:[%s3187_s30 + $0x8] sm:$0xff] %vm559_vm2, %v3311_v46  ;;  %v1424_v59 = vsel %vm559_vm2, %v3311_v46, -inf }
 0x280   : > { %1842 = vadd.xlane.f32.xlu1 %v1841_v3  ;;  %1425 = vmax.xlane.f32.xlu2 %v1424_v59 }
 0x282   : > { %v1206_v51 = vpop.f32.mrf.mxu2 }
 0x283   : > { %v1371_v54 = vadd.f32 %v1355_v17, %v1206_v51  ;;  %v2417_v48 = vpop.eup %2416 }
 0x284   : > { %v1838_v40 = vsel %vm1698_vm1, %v2417_v48, 0.0  ;;  %v2419_v37 = vpop.eup %2418 }
 0x285   : > { %v3331_v4 = vadd.f32 %v3180_v39, %v1371_v54  ;;  %v1847_v28 = vsel %vm1698_vm1, %v2419_v37, 0.0 }
 0x287   : > { %1407 = vst.msk [vmem:[%s3187_s30 + $0x10] sm:$0xff] %vm559_vm2, %v3331_v4  ;;  %v1427_v8 = vsel %vm559_vm2, %v3331_v4, -inf }
 0x288   : > { %1845 = vadd.xlane.f32.xlu2 %v1844_v38  ;;  %1428 = vmax.xlane.f32.xlu0 %v1427_v8 }
 0x28a   : > { %v1208_v57 = vpop.f32.mrf.mxu2 }
 0x28b   : > { %v1372_v43 = vadd.f32 %v1356_v62, %v1208_v57 }
 0x28d   : > { %v3346_v49 = vadd.f32 %v3180_v39, %v1372_v43 }
 0x28f   : > { %1408 = vst.msk [vmem:[%s3187_s30 + $0x18] sm:$0xff] %vm559_vm2, %v3346_v49  ;;  %v1430_v53 = vsel %vm559_vm2, %v3346_v49, -inf }
 0x290   : > { %1431 = vmax.xlane.f32.xlu2 %v1430_v53  ;;  %1839 = vadd.xlane.f32.xlu0 %v1838_v40 }
 0x292   : > { %v1211_v52 = vpop.f32.mrf.mxu2 }
 0x293   : > { %v1373_v2 = vadd.f32 %v1357_v31, %v1211_v52 }
 0x295   : > { %v3356_v63 = vadd.f32 %v3180_v39, %v1373_v2 }
 0x297   : > { %1409 = vst.msk [vmem:[%s3187_s30 + $0x20] sm:$0xff] %vm559_vm2, %v3356_v63  ;;  %v1433_v20 = vsel %vm559_vm2, %v3356_v63, -inf }
 0x298   : > { %1434 = vmax.xlane.f32.xlu1 %v1433_v20  ;;  %1848 = vadd.xlane.f32.xlu0 %v1847_v28 }
 0x29a   : > { %v1213_v30 = vpop.f32.mrf.mxu2 }
 0x29b   : > { %v1374_v22 = vadd.f32 %v1358_v21, %v1213_v30 }
 0x29d   : > { %v3366_v25 = vadd.f32 %v3180_v39, %v1374_v22 }
 0x29f   : > { %1410 = vst.msk [vmem:[%s3187_s30 + $0x28] sm:$0xff] %vm559_vm2, %v3366_v25  ;;  %v1436_v12 = vsel %vm559_vm2, %v3366_v25, -inf }
 0x2a0   : > { %1437 = vmax.xlane.f32.xlu2 %v1436_v12 }
 0x2a9   : > { %v1441_v56 = vpop.xlane.xlu0 %1440 }
 0x2aa   : > { %v3374_v33 = vsub.f32 %v3190_v26, %v1441_v56 }
 0x2ac   : > { %v1497_v16 = vmul.f32 1.442695, %v3374_v33 }
 0x2ae   : > { %2420 = vpow2.f32 %v1497_v16 }
 0x2b1   : > { %v1444_v18 = vpop.xlane.xlu1 %1443 }
 0x2b2   : > { %v3378_v34 = vsub.f32 %v3201_v5, %v1444_v18 }
 0x2b4   : > { %v2421_v39 = vpop.eup %2420  ;;  %v1499_v36 = vmul.f32 1.442695, %v3378_v34 }
 0x2b5   : > { %v1535_v29 = vsel %vm559_vm2, %v2421_v39, 0.0 }
 0x2b6   : > { %2422 = vpow2.f32 %v1499_v36  ;;  %1536 = vadd.xlane.f32.xlu1 %v1535_v29 }
 0x2b9   : > { %v1447_v60 = vpop.xlane.xlu2 %1446 }
 0x2ba   : > { %v3383_v42 = vsub.f32 %v3212_v9, %v1447_v60 }
 0x2bc   : > { %v2423_v26 = vpop.eup %2422  ;;  %v1501_v45 = vmul.f32 1.442695, %v3383_v42 }
 0x2bd   : > { %v1538_v3 = vsel %vm559_vm2, %v2423_v26, 0.0 }
 0x2be   : > { %2424 = vpow2.f32 %v1501_v45  ;;  %1539 = vadd.xlane.f32.xlu2 %v1538_v3 }
 0x2c1   : > { %v1450_v5 = vpop.xlane.xlu0 %1449 }
 0x2c2   : > { %v3388_v59 = vsub.f32 %v3223_v15, %v1450_v5 }
 0x2c4   : > { %v2425_v17 = vpop.eup %2424  ;;  %v1503_v1 = vmul.f32 1.442695, %v3388_v59 }
 0x2c5   : > { %v1541_v51 = vsel %vm559_vm2, %v2425_v17, 0.0 }
 0x2c6   : > { %2426 = vpow2.f32 %v1503_v1  ;;  %1542 = vadd.xlane.f32.xlu0 %v1541_v51 }
 0x2c9   : > { %v1453_v9 = vpop.xlane.xlu1 %1452 }
 0x2ca   : > { %v3393_v54 = vsub.f32 %v3234_v44, %v1453_v9 }
 0x2cc   : > { %v2427_v0 = vpop.eup %2426  ;;  %v1505_v24 = vmul.f32 1.442695, %v3393_v54 }
 0x2cd   : > { %v1544_v38 = vsel %vm559_vm2, %v2427_v0, 0.0 }
 0x2ce   : > { %2428 = vpow2.f32 %v1505_v24  ;;  %1545 = vadd.xlane.f32.xlu1 %v1544_v38 }
 0x2d1   : > { %v1456_v15 = vpop.xlane.xlu2 %1455 }
 0x2d2   : > { %v3398_v8 = vsub.f32 %v3245_v41, %v1456_v15 }
 0x2d4   : > { %v2429_v62 = vpop.eup %2428  ;;  %v1507_v55 = vmul.f32 1.442695, %v3398_v8 }
 0x2d5   : > { %v1547_v57 = vsel %vm559_vm2, %v2429_v62, 0.0 }
 0x2d6   : > { %2430 = vpow2.f32 %v1507_v55  ;;  %1548 = vadd.xlane.f32.xlu2 %v1547_v57  ;;  %v3577_v55 = vld [vmem:[#allocation4_spill] sm:$0xff] }
 0x2d7   : > { %v3446_v57 = vsub.f32 %v3577_v55, %v3124_v13 }
 0x2d9   : > { %v1459_v44 = vpop.xlane.xlu0 %1458 }
 0x2da   : > { %v3403_v43 = vsub.f32 %v3256_v19, %v1459_v44 }
 0x2dc   : > { %v2431_v48 = vpop.eup %2430  ;;  %v1509_v11 = vmul.f32 1.442695, %v3403_v43 }
 0x2dd   : > { %v1550_v53 = vsel %vm559_vm2, %v2431_v48, 0.0 }
 0x2de   : > { %2432 = vpow2.f32 %v1509_v11  ;;  %1551 = vadd.xlane.f32.xlu0 %v1550_v53 }
 0x2e1   : > { %v1462_v41 = vpop.xlane.xlu1 %1461 }
 0x2e2   : > { %v3408_v40 = vsub.f32 %v3267_v32, %v1462_v41 }
 0x2e4   : > { %v2433_v31 = vpop.eup %2432  ;;  %v1511_v52 = vmul.f32 1.442695, %v3408_v40 }
 0x2e5   : > { %v1553_v2 = vsel %vm559_vm2, %v2433_v31, 0.0 }
 0x2e6   : > { %2434 = vpow2.f32 %v1511_v52  ;;  %1554 = vadd.xlane.f32.xlu1 %v1553_v2  ;;  %v3578_v2 = vld [vmem:[#allocation5_spill] sm:$0xff] }
 0x2e9   : > { %v1465_v19 = vpop.xlane.xlu2 %1464 }
 0x2ea   : > { %v3413_v37 = vsub.f32 %v3284_v61, %v1465_v19  ;;  %v3459_v19 = vsub.f32 %v3578_v2, %v3127_v6 }
 0x2eb   : > { %v1423_v35 = vpop.xlane.xlu1 %1422 }
 0x2ec   : > { %v2435_v20 = vpop.eup %2434  ;;  %v1513_v28 = vmul.f32 1.442695, %v3413_v37  ;;  %v3417_v14 = vsub.f32 %v3287_v27, %v1423_v35 }
 0x2ed   : > { %v1556_v32 = vsel %vm559_vm2, %v2435_v20, 0.0 }
 0x2ee   : > { %2436 = vpow2.f32 %v1513_v28  ;;  %1557 = vadd.xlane.f32.xlu2 %v1556_v32  ;;  %v1485_v21 = vmul.f32 1.442695, %v3417_v14  ;;  %v1807_v28 = vmul.f32 1.442695, %v3459_v19 }
 0x2f0   : > { %2438 = vpow2.f32 %v1485_v21 }
 0x2f1   : > { %v1468_v30 = vpop.xlane.xlu0 %1467 }
 0x2f2   : > { %v3422_v22 = vsub.f32 %v3308_v50, %v1468_v30 }
 0x2f3   : > { %v1843_v61 = vpop.xlane.xlu1 %1842  ;;  %v1426_v12 = vpop.xlane.xlu2 %1425 }
 0x2f4   : > { %v2437_v56 = vpop.eup %2436  ;;  %v1515_v16 = vmul.f32 1.442695, %v3422_v22  ;;  %2440 = vlog2.f32 %v1843_v61  ;;  %v3426_v27 = vsub.f32 %v3311_v46, %v1426_v12  ;;  %v3579_v12 = vld [vmem:[#allocation6_spill] sm:$0xff] }
 0x2f5   : > { %v1559_v18 = vsel %vm559_vm2, %v2437_v56, 0.0  ;;  %v3472_v56 = vsub.f32 %v3579_v12, %v3114_v23 }
 0x2f6   : > { %2442 = vpow2.f32 %v1515_v16  ;;  %1560 = vadd.xlane.f32.xlu1 %v1559_v18  ;;  %v1487_v39 = vmul.f32 1.442695, %v3426_v27  ;;  %v2439_v36 = vpop.eup %2438 }
 0x2f7   : > { %v1517_v5 = vsel %vm559_vm2, %v2439_v36, 0.0 }
 0x2f8   : > { %2444 = vpow2.f32 %v1487_v39 }
 0x2fa   : > { %v2441_v50 = vpop.eup %2440 }
 0x2fb   : > { %v1880_v29 = vmul.f32 0.6931472, %v2441_v50  ;;  %v1846_v60 = vpop.xlane.xlu2 %1845  ;;  %v1429_v26 = vpop.xlane.xlu0 %1428 }
 0x2fc   : > { %v2443_v45 = vpop.eup %2442  ;;  %2446 = vlog2.f32 %v1846_v60  ;;  %v3431_v3 = vsub.f32 %v3331_v4, %v1429_v26 }
 0x2fd   : > { %v1901_v46 = vsub.f32 %v3276_v58, %v1880_v29  ;;  %v1562_v17 = vsel %vm559_vm2, %v2443_v45, 0.0 }
 0x2fe   : > { %v1489_v1 = vmul.f32 1.442695, %v3431_v3  ;;  %1518 = vadd.xlane.f32.xlu1 %v1517_v5  ;;  %1563 = vadd.xlane.f32.xlu2 %v1562_v17  ;;  %v2445_v51 = vpop.eup %2444 }
 0x2ff   : > { %1917 = vst.msk [vmem:[%s3133_s20 + $0x50] sm:$0xff] %vm1698_vm1, %v1901_v46  ;;  %v1520_v15 = vsel %vm559_vm2, %v2445_v51, 0.0 }
 0x300   : > { %2448 = vpow2.f32 %v1489_v1 }
 0x302   : > { %v2447_v9 = vpop.eup %2446 }
 0x303   : > { %v1882_v0 = vmul.f32 0.6931472, %v2447_v9  ;;  %v1432_v24 = vpop.xlane.xlu2 %1431  ;;  %v1840_v4 = vpop.xlane.xlu0 %1839 }
 0x304   : > { %v3440_v38 = vsub.f32 %v3346_v49, %v1432_v24  ;;  %2450 = vlog2.f32 %v1840_v4 }
 0x305   : > { %v1902_v58 = vsub.f32 %v3296_v7, %v1882_v0  ;;  %v1805_v7 = vmul.f32 1.442695, %v3446_v57 }
 0x306   : > { %v2449_v62 = vpop.eup %2448  ;;  %v1491_v44 = vmul.f32 1.442695, %v3440_v38  ;;  %1521 = vadd.xlane.f32.xlu2 %v1520_v15 }
 0x307   : > { %1918 = vst.msk [vmem:[%s3133_s20 + $0x58] sm:$0xff] %vm1698_vm1, %v1902_v58  ;;  %v1523_v48 = vsel %vm559_vm2, %v2449_v62, 0.0 }
 0x308   : > { %2452 = vpow2.f32 %v1491_v44  ;;  %1524 = vadd.xlane.f32.xlu0 %v1523_v48 }
 0x30a   : > { %v2451_v49 = vpop.eup %2450 }
 0x30b   : > { %v1878_v11 = vmul.f32 0.6931472, %v2451_v49  ;;  %v1435_v53 = vpop.xlane.xlu1 %1434  ;;  %v1849_v41 = vpop.xlane.xlu0 %1848 }
 0x30c   : > { %v3454_v31 = vsub.f32 %v3356_v63, %v1435_v53  ;;  %2454 = vlog2.f32 %v1849_v41 }
 0x30d   : > { %v1900_v13 = vsub.f32 %v3320_v10, %v1878_v11  ;;  %2456 = vpow2.f32 %v1805_v7 }
 0x30e   : > { %v2453_v52 = vpop.eup %2452  ;;  %v1493_v35 = vmul.f32 1.442695, %v3454_v31 }
 0x30f   : > { %1916 = vst.msk [vmem:[%s3133_s20 + $0x48] sm:$0xff] %vm1698_vm1, %v1900_v13  ;;  %v1526_v20 = vsel %vm559_vm2, %v2453_v52, 0.0 }
 0x310   : > { %2458 = vpow2.f32 %v1493_v35  ;;  %1527 = vadd.xlane.f32.xlu1 %v1526_v20 }
 0x311   : > { %2460 = vpow2.f32 %v1807_v28 }
 0x312   : > { %v2455_v63 = vpop.eup %2454 }
 0x313   : > { %v1884_v32 = vmul.f32 0.6931472, %v2455_v63  ;;  %v1438_v10 = vpop.xlane.xlu2 %1437  ;;  %v2457_v21 = vpop.eup %2456 }
 0x314   : > { %v3467_v30 = vsub.f32 %v3366_v25, %v1438_v10  ;;  %v1850_v18 = vsel %vm1698_vm1, %v2457_v21, 0.0  ;;  %v1809_v25 = vmul.f32 1.442695, %v3472_v56 }
 0x315   : > { %v1903_v6 = vsub.f32 %v3335_v47, %v1884_v32 }
 0x316   : > { %v2459_v61 = vpop.eup %2458  ;;  %v1495_v16 = vmul.f32 1.442695, %v3467_v30 }
 0x317   : > { %1919 = vst.msk [vmem:[%s3133_s20 + $0x60] sm:$0xff] %vm1698_vm1, %v1903_v6  ;;  %v1529_v39 = vsel %vm559_vm2, %v2459_v61, 0.0  ;;  %v2461_v47 = vpop.eup %2460 }
 0x318   : > { %2462 = vpow2.f32 %v1495_v16  ;;  %1851 = vadd.xlane.f32.xlu1 %v1850_v18  ;;  %1530 = vadd.xlane.f32.xlu2 %v1529_v39  ;;  %v1853_v23 = vsel %vm1698_vm1, %v2461_v47, 0.0 }
 0x319   : > { %2464 = vpow2.f32 %v1809_v25 }
 0x31e   : > { %v2463_v36 = vpop.eup %2462 }
 0x31f   : > { %v1532_v50 = vsel %vm559_vm2, %v2463_v36, 0.0  ;;  %v2465_v29 = vpop.eup %2464 }
 0x320   : > { %1854 = vadd.xlane.f32.xlu2 %v1853_v23  ;;  %1533 = vadd.xlane.f32.xlu0 %v1532_v50  ;;  %v1856_v60 = vsel %vm1698_vm1, %v2465_v29, 0.0 }
 0x328   : > { %1857 = vadd.xlane.f32.xlu0 %v1856_v60 }
 0x329   : > { %v1537_v26 = vpop.xlane.xlu1 %1536 }
 0x32a   : > { %2466 = vlog2.f32 %v1537_v26 }
 0x330   : > { %v2467_v45 = vpop.eup %2466 }
 0x331   : > { %v1578_v46 = vmul.f32 0.6931472, %v2467_v45  ;;  %v1540_v5 = vpop.xlane.xlu2 %1539 }
 0x332   : > { %2468 = vlog2.f32 %v1540_v5 }
 0x333   : > { %v1603_v17 = vsub.f32 %v3374_v33, %v1578_v46 }
 0x335   : > { %1619 = vst.msk [vmem:[%s3487_s21 + $0x30] sm:$0xff] %vm559_vm2, %v1603_v17 }
 0x338   : > { %v2469_v1 = vpop.eup %2468 }
 0x339   : > { %v1580_v51 = vmul.f32 0.6931472, %v2469_v1  ;;  %v1543_v9 = vpop.xlane.xlu0 %1542 }
 0x33a   : > { %2470 = vlog2.f32 %v1543_v9 }
 0x33b   : > { %v1604_v0 = vsub.f32 %v3378_v34, %v1580_v51 }
 0x33d   : > { %1620 = vst.msk [vmem:[%s3487_s21 + $0x38] sm:$0xff] %vm559_vm2, %v1604_v0 }
 0x340   : > { %v2471_v24 = vpop.eup %2470 }
 0x341   : > { %v1582_v4 = vmul.f32 0.6931472, %v2471_v24  ;;  %v1546_v58 = vpop.xlane.xlu1 %1545 }
 0x342   : > { %2472 = vlog2.f32 %v1546_v58 }
 0x343   : > { %v1605_v15 = vsub.f32 %v3383_v42, %v1582_v4 }
 0x345   : > { %1621 = vst.msk [vmem:[%s3487_s21 + $0x40] sm:$0xff] %vm559_vm2, %v1605_v15 }
 0x348   : > { %v2473_v33 = vpop.eup %2472 }
 0x349   : > { %v1584_v62 = vmul.f32 0.6931472, %v2473_v33  ;;  %v1549_v55 = vpop.xlane.xlu2 %1548 }
 0x34a   : > { %2474 = vlog2.f32 %v1549_v55 }
 0x34b   : > { %v1606_v44 = vsub.f32 %v3388_v59, %v1584_v62 }
 0x34d   : > { %1622 = vst.msk [vmem:[%s3487_s21 + $0x48] sm:$0xff] %vm559_vm2, %v1606_v44 }
 0x350   : > { %v2475_v34 = vpop.eup %2474 }
 0x351   : > { %v1586_v48 = vmul.f32 0.6931472, %v2475_v34  ;;  %v1552_v49 = vpop.xlane.xlu0 %1551 }
 0x352   : > { %2476 = vlog2.f32 %v1552_v49 }
 0x353   : > { %v1607_v7 = vsub.f32 %v3393_v54, %v1586_v48 }
 0x355   : > { %1623 = vst.msk [vmem:[%s3487_s21 + $0x50] sm:$0xff] %vm559_vm2, %v1607_v7 }
 0x358   : > { %v2477_v42 = vpop.eup %2476 }
 0x359   : > { %v1588_v11 = vmul.f32 0.6931472, %v2477_v42  ;;  %v1555_v53 = vpop.xlane.xlu1 %1554 }
 0x35a   : > { %2478 = vlog2.f32 %v1555_v53 }
 0x35b   : > { %v1608_v41 = vsub.f32 %v3398_v8, %v1588_v11 }
 0x35d   : > { %1624 = vst.msk [vmem:[%s3487_s21 + $0x58] sm:$0xff] %vm559_vm2, %v1608_v41 }
 0x360   : > { %v2479_v59 = vpop.eup %2478 }
 0x361   : > { %v1590_v13 = vmul.f32 0.6931472, %v2479_v59  ;;  %v1558_v52 = vpop.xlane.xlu2 %1557 }
 0x362   : > { %2480 = vlog2.f32 %v1558_v52 }
 0x363   : > { %v1609_v2 = vsub.f32 %v3403_v43, %v1590_v13 }
 0x365   : > { %1625 = vst.msk [vmem:[%s3487_s21 + $0x60] sm:$0xff] %vm559_vm2, %v1609_v2 }
 0x368   : > { %v2481_v54 = vpop.eup %2480 }
 0x369   : > { %v1592_v35 = vmul.f32 0.6931472, %v2481_v54  ;;  %v1561_v20 = vpop.xlane.xlu1 %1560 }
 0x36a   : > { %2482 = vlog2.f32 %v1561_v20 }
 0x36b   : > { %v1610_v63 = vsub.f32 %v3408_v40, %v1592_v35 }
 0x36d   : > { %1626 = vst.msk [vmem:[%s3487_s21 + $0x68] sm:$0xff] %vm559_vm2, %v1610_v63 }
 0x370   : > { %v2483_v8 = vpop.eup %2482 }
 0x371   : > { %v1594_v28 = vmul.f32 0.6931472, %v2483_v8  ;;  %v1519_v32 = vpop.xlane.xlu1 %1518  ;;  %v1564_v10 = vpop.xlane.xlu2 %1563 }
 0x372   : > { %2484 = vlog2.f32 %v1519_v32 }
 0x373   : > { %v1611_v21 = vsub.f32 %v3413_v37, %v1594_v28  ;;  %2486 = vlog2.f32 %v1564_v10 }
 0x375   : > { %1627 = vst.msk [vmem:[%s3487_s21 + $0x70] sm:$0xff] %vm559_vm2, %v1611_v21 }
 0x378   : > { %v2485_v43 = vpop.eup %2484 }
 0x379   : > { %v2487_v6 = vpop.eup %2486  ;;  %v1566_v61 = vmul.f32 0.6931472, %v2485_v43  ;;  %v1522_v12 = vpop.xlane.xlu2 %1521 }
 0x37a   : > { %v1596_v40 = vmul.f32 0.6931472, %v2487_v6  ;;  %2488 = vlog2.f32 %v1522_v12 }
 0x37b   : > { %v1597_v16 = vsub.f32 %v3417_v14, %v1566_v61  ;;  %v1525_v18 = vpop.xlane.xlu0 %1524 }
 0x37c   : > { %v1612_v39 = vsub.f32 %v3422_v22, %v1596_v40  ;;  %2490 = vlog2.f32 %v1525_v18 }
 0x37d   : > { %1613 = vst.msk [vmem:[%s3487_s21] sm:$0xff] %vm559_vm2, %v1597_v16 }
 0x37e   : > { %1628 = vst.msk [vmem:[%s3487_s21 + $0x78] sm:$0xff] %vm559_vm2, %v1612_v39 }
 0x380   : > { %v2489_v37 = vpop.eup %2488 }
 0x381   : > { %v1568_v25 = vmul.f32 0.6931472, %v2489_v37 }
 0x382   : > { %v2491_v47 = vpop.eup %2490 }
 0x383   : > { %v1598_v36 = vsub.f32 %v3426_v27, %v1568_v25  ;;  %v1570_v23 = vmul.f32 0.6931472, %v2491_v47  ;;  %v1528_v50 = vpop.xlane.xlu1 %1527 }
 0x384   : > { %2492 = vlog2.f32 %v1528_v50 }
 0x385   : > { %1614 = vst.msk [vmem:[%s3487_s21 + $0x8] sm:$0xff] %vm559_vm2, %v1598_v36  ;;  %v1599_v14 = vsub.f32 %v3431_v3, %v1570_v23 }
 0x387   : > { %1615 = vst.msk [vmem:[%s3487_s21 + $0x10] sm:$0xff] %vm559_vm2, %v1599_v14 }
 0x38a   : > { %v2493_v22 = vpop.eup %2492 }
 0x38b   : > { %v1572_v29 = vmul.f32 0.6931472, %v2493_v22  ;;  %v1852_v60 = vpop.xlane.xlu1 %1851  ;;  %v1531_v26 = vpop.xlane.xlu2 %1530 }
 0x38c   : > { %2494 = vlog2.f32 %v1852_v60 }
 0x38d   : > { %v1600_v45 = vsub.f32 %v3440_v38, %v1572_v29  ;;  %2496 = vlog2.f32 %v1531_v26 }
 0x38f   : > { %1616 = vst.msk [vmem:[%s3487_s21 + $0x18] sm:$0xff] %vm559_vm2, %v1600_v45 }
 0x392   : > { %v2495_v27 = vpop.eup %2494 }
 0x393   : > { %v2497_v46 = vpop.eup %2496  ;;  %v1886_v5 = vmul.f32 0.6931472, %v2495_v27  ;;  %v1855_v17 = vpop.xlane.xlu2 %1854 }
 0x394   : > { %v1534_v1 = vpop.xlane.xlu0 %1533  ;;  %v1574_v3 = vmul.f32 0.6931472, %v2497_v46  ;;  %2498 = vlog2.f32 %v1855_v17 }
 0x395   : > { %v1904_v51 = vsub.f32 %v3446_v57, %v1886_v5  ;;  %2500 = vlog2.f32 %v1534_v1 }
 0x396   : > { %v1601_v9 = vsub.f32 %v3454_v31, %v1574_v3 }
 0x397   : > { %1920 = vst.msk [vmem:[%s3133_s20 + $0x68] sm:$0xff] %vm1698_vm1, %v1904_v51 }
 0x398   : > { %1617 = vst.msk [vmem:[%s3487_s21 + $0x20] sm:$0xff] %vm559_vm2, %v1601_v9 }
 0x39a   : > { %v2499_v38 = vpop.eup %2498 }
 0x39b   : > { %v2501_v0 = vpop.eup %2500  ;;  %v1888_v24 = vmul.f32 0.6931472, %v2499_v38 }
 0x39c   : > { %v1858_v4 = vpop.xlane.xlu0 %1857  ;;  %v1576_v58 = vmul.f32 0.6931472, %v2501_v0 }
 0x39d   : > { %2502 = vlog2.f32 %v1858_v4  ;;  %v1905_v15 = vsub.f32 %v3459_v19, %v1888_v24 }
 0x39e   : > { %v1602_v33 = vsub.f32 %v3467_v30, %v1576_v58 }
 0x39f   : > { %1921 = vst.msk [vmem:[%s3133_s20 + $0x70] sm:$0xff] %vm1698_vm1, %v1905_v15 }
 0x3a0   : > { %1618 = vst.msk [vmem:[%s3487_s21 + $0x28] sm:$0xff] %vm559_vm2, %v1602_v33 }
 0x3a3   : > { %v2503_v57 = vpop.eup %2502 }
 0x3a4   : > { %v1890_v31 = vmul.f32 0.6931472, %v2503_v57 }
 0x3a6   : > { %v1906_v62 = vsub.f32 %v3472_v56, %v1890_v31 }
 0x3a8   : > { %1922 = vst.msk [vmem:[%s3133_s20 + $0x78] sm:$0xff] %vm1698_vm1, %v1906_v62 }
 0x3a9 PF: > { %s23_s23 = sadd.s32 1, %s2526_s23   ;;  %s3580_s21 = smov %s2522_s22 }
 0x3aa   : > { %p20_p6 = scmp.ge.s32.totalorder %s23_s23, 4   ;;  %s3581_s22 = smov %s3583_s24 }
 0x3ac   :  { %22 = sbr.rel (!%p20_p6) target bundleno = 2 (0x2), region = 139 }

// kernel: stand_sage_forward.2
= control target key start
LH: loop header
LB: loop body
LE: loop exit
PB: predicated region body
PF: predicated region fallthrough
CT: control target
= control target key end

     0   :  { %s1727_s24 = smov 0   ;;  %s1729_s25 = smov 0   ;;  %s2020_s0 = inlined_call_operand.vmem [shape: s8[256,256], index: 0, kind: input, shape index: {}]   ;;  %s2021_s1 = inlined_call_operand.vmem [shape: bf16[256,64], index: 1, kind: input, shape index: {}, may-alias: {1,2}]   ;;  %s2022_s2 = inlined_call_operand.vmem [shape: bf16[256,64], index: 2, kind: input, shape index: {}, may-alias: {1,2}]   ;;  %s2023_s3 = inlined_call_operand.vmem [shape: bf16[64,32], index: 3, kind: input, shape index: {}]   ;;  %s2024_s4 = inlined_call_operand.vmem [shape: bf16[64,32], index: 4, kind: input, shape index: {}]   ;;  %s2025_s5 = inlined_call_operand.vmem [shape: f32[1,32], index: 5, kind: input, shape index: {}]   ;;  %s2026_s6 = inlined_call_operand.vmem [shape: f32[256,1], index: 6, kind: input, shape index: {}]   ;;  %s2027_s7 = inlined_call_operand.vmem [shape: bf16[256,32], index: 7, kind: output, shape index: {}]  }
   0x1   :  { %s1731_s26 = smov 0  }
   0x2 LB: > { %s29_s27 = sadd.s32 1, %s1679_s25  ;;  %p1426_p0 = scmp.ge.s32.totalorder %s1683_s26, 1  ;;  %s1683_s26 = sphi %s1731_s26, %s17_s26   ;;  %s1679_s25 = sphi %s1729_s25, %s2029_s25   ;;  %s1675_s24 = sphi %s1727_s24, %s2028_s24  }
   0x3   : > { %p31_p1 = scmp.ge.s32.totalorder %s29_s27, 2  ;;  %p291_p2 = scmp.lt.s32.totalorder %s1683_s26, 3 }
   0x5   : > { %s2031_s27 = smov (%p31_p1, %s29_s27), 0  ;;  %p292_p3 = pnand %p1426_p0, %p291_p2 }
   0x6   : > { %s1427_s9 = sshll.u32 (!%p292_p3), %s1675_s24, 2  ;;  %s1430_s12 = sshll.u32 (!%p292_p3), %s1675_s24, 4 }
   0x7   : > { %295 = sbr.rel (%p292_p3) target bundleno = 610 (0x262), region = 48  ;;  %p345_p4 = scmp.lt.s32.totalorder (!%p292_p3), %s1427_s9, 7 }
   0x8   : > { %p362_p5 = scmp.lt.s32.totalorder (!%p292_p3), %s1430_s12, 31 }
   0xc   : > { %v1610_v0 = vld [vmem:[%s2023_s3 + $0x18] sm:$0xff]  ;;  %v1609_v1 = vld [vmem:[%s2023_s3 + $0x10] sm:$0xff]  ;;  %v1608_v2 = vld [vmem:[%s2023_s3 + $0x8] sm:$0xff]  ;;  %vm545_vm0 = vcmask 523264   ;;  %s2033_s9 = smov (!%p345_p4, %s1427_s9), 7  ;;  %s2035_s12 = smov (!%p362_p5, %s1430_s12), 31 }
   0xd   : > { %598 = vmatpush.bf16.msra.mxu0 %v1610_v0  ;;  %1624 = vmatpush.bf16.msra.mxu3 %v1610_v0  ;;  %v1607_v3 = vld [vmem:[%s2023_s3] sm:$0xff]  ;;  %v1592_v5 = vld [vmem:[%s2021_s1 + $0x8] sm:$0xff]  ;;  %v1593_v7 = vld [vmem:[%s2021_s1 + $0x10] sm:$0xff]  ;;  %s1590_s13 = sshll.u32 %s2033_s9, 4  ;;  %s1431_s24 = sshll.u32 %s2035_s12, 2  ;;  %vm384_vm1 = vcmask 261120  }
   0xe   : > { %1623 = vmatpush.bf16.msra.mxu1 %v1610_v0  ;;  %v1591_v4 = vld [vmem:[%s2021_s1] sm:$0xff]  ;;  %v1604_v6 = vld [vmem:[%s2021_s1 + $0x68] sm:$0xff]  ;;  %v1605_v8 = vld [vmem:[%s2021_s1 + $0x70] sm:$0xff]  ;;  %s1848_s16 = scalar_lea.vmem %s2020_s0, %s1590_s13  ;;  %s1865_s21 = scalar_lea.vmem %s2022_s2, %s1431_s24  ;;  %vm1294_vm2 = vcmask 257024  }
   0xf   : > { %v1594_v9 = vld [vmem:[%s2021_s1 + $0x18] sm:$0xff]  ;;  %v1595_v11 = vld [vmem:[%s2021_s1 + $0x20] sm:$0xff]  ;;  %v1596_v13 = vld [vmem:[%s2021_s1 + $0x28] sm:$0xff]  ;;  %s1433_s28 = sshll.u32 %s2035_s12, 3  ;;  %s1948_s14 = scalar_lea.vmem %s2027_s7, %s1431_s24 }
  0x10   : > { %v1606_v10 = vld [vmem:[%s2021_s1 + $0x78] sm:$0xff]  ;;  %v1603_v14 = vld [vmem:[%s2021_s1 + $0x60] sm:$0xff]  ;;  %v1597_v15 = vld [vmem:[%s2021_s1 + $0x30] sm:$0xff]  ;;  %s1879_s8 = scalar_lea.vmem %s2026_s6, %s1433_s28 }
  0x11   : > { %599 = vmatpush.bf16.msra.mxu0 %v1609_v1  ;;  %1626 = vmatpush.bf16.msra.mxu3 %v1609_v1  ;;  %v1602_v12 = vld [vmem:[%s2021_s1 + $0x58] sm:$0xff]  ;;  %v1599_v17 = vld [vmem:[%s2021_s1 + $0x40] sm:$0xff]  ;;  %v1600_v21 = vld [vmem:[%s2021_s1 + $0x48] sm:$0xff] }
  0x12   : > { %1625 = vmatpush.bf16.msra.mxu1 %v1609_v1  ;;  %v1598_v16 = vld [vmem:[%s2021_s1 + $0x38] sm:$0xff]  ;;  %v1601_v26 = vld [vmem:[%s2021_s1 + $0x50] sm:$0xff]  ;;  %v1620_v63 = vld [vmem:[%s2024_s4 + $0x8] sm:$0xff] }
  0x13   : > { %v1622_v54 = vld [vmem:[%s2024_s4 + $0x18] sm:$0xff]  ;;  %v1621_v59 = vld [vmem:[%s2024_s4 + $0x10] sm:$0xff]  ;;  %v683_v0 = vld [vmem:[%s1848_s16] sm:$0xff] }
  0x14   : > { %v691_v1 = vunpack.c.0.s8 %v683_v0 }
  0x15   : > { %600 = vmatpush.bf16.msra.mxu0 %v1608_v2  ;;  %1628 = vmatpush.bf16.msra.mxu3 %v1608_v2 }
  0x16   : > { %1627 = vmatpush.bf16.msra.mxu1 %v1608_v2  ;;  %v693_v2 = vunpack.c.1.s8 %v683_v0 }
  0x19   : > { %601 = vmatpush.bf16.msra.mxu0 %v1607_v3  ;;  %1630 = vmatpush.bf16.msra.mxu3 %v1607_v3 }
  0x1a   : > { %1629 = vmatpush.bf16.msra.mxu1 %v1607_v3 }
  0x1c   : > { %1516 = vmatmul.msk.bf16.vlgmr.msra.gmra.mxu0 %vm545_vm0, %v1591_v4  ;;  %1529 = vmatmul.msk.bf16.vlgmr.msra.gmra.mxu3 %vm545_vm0, %v1604_v6  ;;  %v723_v4 = vcvt.s32.f32 %v691_v1 }
  0x1d   : > { %1527 = vmatmul.msk.bf16.vlgmr.msra.gmra.mxu1 %vm545_vm0, %v1602_v12  ;;  %1053 = vmatpush.bf16.msrb.mxu3 %v1622_v54 }
  0x21   : > { %1054 = vmatpush.bf16.msrb.mxu3 %v1621_v59 }
  0x25   : > { %1055 = vmatpush.bf16.msrb.mxu3 %v1620_v63  ;;  %v1615_v63 = vld [vmem:[%s1865_s21 + $0x20] sm:$0xff] }
  0x2c   : > { %1517 = vmatmul.msk.bf16.gmra.mxu0 %vm545_vm0, %v1592_v5  ;;  %1530 = vmatmul.msk.bf16.gmra.mxu3 %vm545_vm0, %v1605_v8  ;;  %v725_v5 = vcvt.s32.f32 %v693_v2  ;;  %v1611_v8 = vld [vmem:[%s1865_s21] sm:$0xff] }
  0x2d   : > { %1528 = vmatmul.msk.bf16.gmra.mxu1 %vm545_vm0, %v1603_v14 }
  0x2e   : > { %v755_v6 = vpack.c.bf16 %v725_v5, %v723_v4 }
  0x3c   : > { %1518 = vmatmul.msk.bf16.gmra.mxu0 %vm545_vm0, %v1593_v7  ;;  %1531 = vmatmul.msk.bf16.gmra.mxu3 %vm545_vm0, %v1606_v10  ;;  %v1619_v7 = vld [vmem:[%s2024_s4] sm:$0xff]  ;;  %v695_v10 = vunpack.c.2.s8 %v683_v0 }
  0x3d   : > { %1056 = vmatpush.bf16.msrb.mxu3 %v1619_v7 }
  0x4c   : > { %1519 = vmatmul.msk.bf16.gmra.mxu0 %vm545_vm0, %v1594_v9  ;;  %1580 = vmatmul.msk.bf16.vlgmr.msrb.gmra.mxu3 %vm545_vm0, %v1611_v8 }
  0x5c   : > { %1520 = vmatmul.msk.bf16.gmra.mxu0 %vm545_vm0, %v1595_v11  ;;  %v697_v11 = vunpack.c.3.s8 %v683_v0 }
  0x5e   : > { %v729_v14 = vcvt.s32.f32 %v697_v11  ;;  %v1121_v11 = vld [vmem:[%s1879_s8 + $0x38] sm:$0xff] }
  0x6c   : > { %1521 = vmatmul.msk.bf16.gmra.mxu0 %vm545_vm0, %v1596_v13  ;;  %v727_v13 = vcvt.s32.f32 %v695_v10  ;;  %v1118_v10 = vld [vmem:[%s1879_s8 + $0x20] sm:$0xff] }
  0x7c   : > { %1522 = vmatmul.msk.bf16.gmra.mxu0 %vm545_vm0, %v1597_v15  ;;  %v757_v15 = vpack.c.bf16 %v729_v14, %v727_v13  ;;  %v1616_v13 = vld [vmem:[%s1865_s21 + $0x28] sm:$0xff] }
  0x7d   : > { %v1123_v14 = vld [vmem:[%s1879_s8 + $0x48] sm:$0xff] }
  0x8c   : > { %1523 = vmatmul.msk.bf16.gmra.mxu0 %vm545_vm0, %v1598_v16  ;;  %v1114_v16 = vld [vmem:[%s1879_s8] sm:$0xff] }
  0x99   : > { %v1814_v18 = vpop.f32.mrf.mxu0 }
  0x9a   : > { %v658_v43 = vpop.f32.mrf.mxu1 }
  0x9c   : > { %1524 = vmatmul.msk.bf16.gmra.mxu0 %vm545_vm0, %v1599_v17  ;;  %v684_v17 = vld [vmem:[%s1848_s16 + $0x8] sm:$0xff] }
  0x9f   : > { %v668_v25 = vpop.f32.mrf.mxu3 }
  0xa1   : > { %v1817_v19 = vpop.f32.mrf.mxu0 }
  0xa2   : > { %v787_v20 = vpack.c.bf16 %v1817_v19, %v1814_v18  ;;  %v660_v45 = vpop.f32.mrf.mxu1  ;;  %v1612_v18 = vld [vmem:[%s1865_s21 + $0x8] sm:$0xff]  ;;  %v1685_v19 = vmov 0  }
  0xa3   : > { %v798_v51 = vpack.c.bf16 %v660_v45, %v658_v43  ;;  %1657 = vset.pattern.permute.xlu0 %v1685_v19  ;;  %1658 = vset.pattern.permute.xlu1 %v1685_v19 }
  0xa4   : > { %1132 = vperm.xlu0 %1657, %v1114_v16   ;;  %1659 = vset.pattern.permute.xlu2 %v1685_v19 }
  0xa5   : > { %1581 = vmatmul.msk.bf16.gmra.mxu3 %vm545_vm0, %v1612_v18  ;;  %1152 = vperm.xlu2 %1659, %v1118_v10   ;;  %v1119_v18 = vld [vmem:[%s1879_s8 + $0x28] sm:$0xff] }
  0xa7   : > { %v670_v28 = vpop.f32.mrf.mxu3 }
  0xa8   : > { %v800_v41 = vpack.c.bf16 %v670_v28, %v668_v25 }
  0xa9   : > { %v1824_v22 = vpop.f32.mrf.mxu0 }
  0xaa   : > { %v663_v47 = vpop.f32.mrf.mxu1 }
  0xac   : > { %1525 = vmatmul.msk.bf16.gmra.mxu0 %vm545_vm0, %v1600_v21 }
  0xad   : > { %1157 = vperm.xlu2 %1659, %v1119_v18  }
  0xaf   : > { %v673_v31 = vpop.f32.mrf.mxu3 }
  0xb1   : > { %v1827_v23 = vpop.f32.mrf.mxu0 }
  0xb2   : > { %v788_v24 = vpack.c.bf16 %v1827_v23, %v1824_v22  ;;  %v665_v49 = vpop.f32.mrf.mxu1  ;;  %v692_v22 = vunpack.c.0.s8 %v684_v17  ;;  %v694_v23 = vunpack.c.1.s8 %v684_v17 }
  0xb3   : > { %v799_v50 = vpack.c.bf16 %v665_v49, %v663_v47  ;;  %v686_v49 = vld [vmem:[%s1848_s16 + $0x18] sm:$0xff] }
  0xb4   : > { %v704_v0 = vunpack.c.2.s8 %v686_v49  ;;  %v706_v1 = vunpack.c.3.s8 %v686_v49 }
  0xb6   : > { %v736_v2 = vcvt.s32.f32 %v704_v0 }
  0xb7   : > { %v675_v33 = vpop.f32.mrf.mxu3 }
  0xb8   : > { %v801_v40 = vpack.c.bf16 %v675_v33, %v673_v31 }
  0xb9   : > { %v613_v27 = vpop.f32.mrf.mxu0 }
  0xbc   : > { %1526 = vmatmul.msk.bf16.gmra.mxu0 %vm545_vm0, %v1601_v26  ;;  %v724_v26 = vcvt.s32.f32 %v692_v22 }
  0xbf   : > { %v678_v36 = vpop.f32.mrf.mxu3 }
  0xc1   : > { %v615_v29 = vpop.f32.mrf.mxu0 }
  0xc2   : > { %v789_v30 = vpack.c.bf16 %v615_v29, %v613_v27  ;;  %v726_v27 = vcvt.s32.f32 %v694_v23 }
  0xc4   : > { %v756_v31 = vpack.c.bf16 %v726_v27, %v724_v26  ;;  %v1126_v27 = vld [vmem:[%s1879_s8 + $0x60] sm:$0xff] }
  0xc7   : > { %v680_v38 = vpop.f32.mrf.mxu3 }
  0xc8   : > { %v802_v39 = vpack.c.bf16 %v680_v38, %v678_v36  ;;  %v1116_v36 = vld [vmem:[%s1879_s8 + $0x10] sm:$0xff]  ;;  %v696_v38 = vunpack.c.2.s8 %v684_v17 }
  0xc9   : > { %v618_v32 = vpop.f32.mrf.mxu0  ;;  %1142 = vperm.xlu1 %1658, %v1116_v36  }
  0xca   : > { %852 = vmatpush.bf16.msra.mxu2 %v802_v39  ;;  %v698_v39 = vunpack.c.3.s8 %v684_v17  ;;  %v689_v17 = vld [vmem:[%s1848_s16 + $0x30] sm:$0xff] }
  0xcb   : > { %v717_v22 = vunpack.c.1.s8 %v689_v17  ;;  %v721_v36 = vunpack.c.3.s8 %v689_v17 }
  0xce   : > { %853 = vmatpush.bf16.msra.mxu2 %v801_v40  ;;  %v728_v40 = vcvt.s32.f32 %v696_v38 }
  0xd1   : > { %v620_v34 = vpop.f32.mrf.mxu0 }
  0xd2   : > { %v790_v35 = vpack.c.bf16 %v620_v34, %v618_v32  ;;  %854 = vmatpush.bf16.msra.mxu2 %v800_v41  ;;  %v730_v41 = vcvt.s32.f32 %v698_v39  ;;  %v753_v39 = vcvt.s32.f32 %v721_v36 }
  0xd6   : > { %855 = vmatpush.bf16.msra.mxu2 %v799_v50  ;;  %v1614_v50 = vld [vmem:[%s1865_s21 + $0x18] sm:$0xff] }
  0xd9   : > { %v623_v37 = vpop.f32.mrf.mxu0 }
  0xda   : > { %856 = vmatpush.bf16.msra.mxu2 %v798_v51  ;;  %v700_v51 = vunpack.c.0.s8 %v686_v49 }
  0xdc   : > { %v732_v54 = vcvt.s32.f32 %v700_v51 }
  0xe1   : > { %v625_v42 = vpop.f32.mrf.mxu0 }
  0xe2   : > { %v791_v61 = vpack.c.bf16 %v625_v42, %v623_v37  ;;  %v1613_v37 = vld [vmem:[%s1865_s21 + $0x10] sm:$0xff] }
  0xe3   : > { %1582 = vmatmul.msk.bf16.gmra.mxu3 %vm545_vm0, %v1613_v37 }
  0xe9   : > { %v628_v44 = vpop.f32.mrf.mxu0 }
  0xf1   : > { %v630_v46 = vpop.f32.mrf.mxu0 }
  0xf2   : > { %v792_v60 = vpack.c.bf16 %v630_v46, %v628_v44  ;;  %v758_v44 = vpack.c.bf16 %v730_v41, %v728_v40  ;;  %v1122_v41 = vld [vmem:[%s1879_s8 + $0x40] sm:$0xff] }
  0xf3   : > { %1583 = vmatmul.msk.bf16.gmra.mxu3 %vm545_vm0, %v1614_v50  ;;  %1172 = vperm.xlu2 %1659, %v1122_v41  }
  0xf9   : > { %v633_v48 = vpop.f32.mrf.mxu0 }
 0x101   : > { %v635_v52 = vpop.f32.mrf.mxu0 }
 0x102   : > { %v793_v57 = vpack.c.bf16 %v635_v52, %v633_v48  ;;  %v1117_v48 = vld [vmem:[%s1879_s8 + $0x18] sm:$0xff]  ;;  %v702_v52 = vunpack.c.1.s8 %v686_v49 }
 0x103   : > { %1147 = vperm.xlu1 %1658, %v1117_v48   ;;  %1584 = vmatmul.msk.bf16.gmra.mxu3 %vm545_vm0, %v1615_v63 }
 0x109   : > { %v638_v53 = vpop.f32.mrf.mxu0 }
 0x10b   : > { %1167 = vperm.xlu1 %1658, %v1121_v11  }
 0x111   : > { %v640_v55 = vpop.f32.mrf.mxu0 }
 0x112   : > { %v794_v56 = vpack.c.bf16 %v640_v55, %v638_v53  ;;  %v687_v53 = vld [vmem:[%s1848_s16 + $0x20] sm:$0xff]  ;;  %v734_v55 = vcvt.s32.f32 %v702_v52 }
 0x113   : > { %v711_v4 = vunpack.c.2.s8 %v687_v53  ;;  %v713_v5 = vunpack.c.3.s8 %v687_v53  ;;  %1585 = vmatmul.msk.bf16.gmra.mxu3 %vm545_vm0, %v1616_v13 }
 0x114   : > { %803 = vmatpush.bf16.msrb.mxu1 %v794_v56  ;;  %v707_v56 = vunpack.c.0.s8 %v687_v53 }
 0x115   : > { %v743_v7 = vcvt.s32.f32 %v711_v4  ;;  %v745_v8 = vcvt.s32.f32 %v713_v5 }
 0x116   : > { %v739_v59 = vcvt.s32.f32 %v707_v56 }
 0x118   : > { %804 = vmatpush.bf16.msrb.mxu1 %v793_v57  ;;  %v709_v57 = vunpack.c.1.s8 %v687_v53  ;;  %v1125_v53 = vld [vmem:[%s1879_s8 + $0x58] sm:$0xff] }
 0x119   : > { %v1839_v58 = vpop.f32.mrf.mxu0  ;;  %1187 = vperm.xlu2 %1659, %v1125_v53   ;;  %v1153_v53 = vpop.permute.xlu2 %1152 }
 0x11c   : > { %805 = vmatpush.bf16.msrb.mxu1 %v792_v60  ;;  %v741_v60 = vcvt.s32.f32 %v709_v57 }
 0x120   : > { %806 = vmatpush.bf16.msrb.mxu1 %v791_v61  ;;  %v763_v61 = vpack.c.bf16 %v741_v60, %v739_v59  ;;  %v1058_v60 = vpop.f32.mrf.mxu3 }
 0x121   : > { %v645_v62 = vpop.f32.mrf.mxu0 }
 0x124   : > { %807 = vmatpush.bf16.msrb.mxu1 %v790_v35  ;;  %v1115_v35 = vld [vmem:[%s1879_s8 + $0x8] sm:$0xff] }
 0x125   : > { %1137 = vperm.xlu0 %1657, %v1115_v35   ;;  %v719_v35 = vunpack.c.2.s8 %v689_v17 }
 0x127   : > { %v751_v38 = vcvt.s32.f32 %v719_v35 }
 0x128   : > { %808 = vmatpush.bf16.msrb.mxu1 %v789_v30  ;;  %v795_v30 = vpack.c.bf16 %v645_v62, %v1839_v58  ;;  %v760_v58 = vpack.c.bf16 %v734_v55, %v732_v54  ;;  %v1120_v62 = vld [vmem:[%s1879_s8 + $0x30] sm:$0xff] }
 0x129   : > { %v648_v3 = vpop.f32.mrf.mxu0  ;;  %v769_v40 = vpack.c.bf16 %v753_v39, %v751_v38 }
 0x12c   : > { %809 = vmatpush.bf16.msrb.mxu1 %v788_v24  ;;  %v685_v24 = vld [vmem:[%s1848_s16 + $0x10] sm:$0xff] }
 0x12d   : > { %v699_v28 = vunpack.c.0.s8 %v685_v24  ;;  %v701_v29 = vunpack.c.1.s8 %v685_v24  ;;  %v703_v42 = vunpack.c.2.s8 %v685_v24  ;;  %v705_v43 = vunpack.c.3.s8 %v685_v24  ;;  %1162 = vperm.xlu0 %1657, %v1120_v62   ;;  %v1060_v62 = vpop.f32.mrf.mxu3 }
 0x12f   : > { %v731_v32 = vcvt.s32.f32 %v699_v28  ;;  %v733_v33 = vcvt.s32.f32 %v701_v29  ;;  %v735_v45 = vcvt.s32.f32 %v703_v42  ;;  %v737_v46 = vcvt.s32.f32 %v705_v43  ;;  %v1124_v28 = vld [vmem:[%s1879_s8 + $0x50] sm:$0xff]  ;;  %v1127_v42 = vld [vmem:[%s1879_s8 + $0x68] sm:$0xff]  ;;  %v690_v43 = vld [vmem:[%s1848_s16 + $0x38] sm:$0xff] }
 0x130   : > { %810 = vmatpush.bf16.msrb.mxu1 %v787_v20  ;;  %v1617_v29 = vld [vmem:[%s1865_s21 + $0x30] sm:$0xff]  ;;  %1182 = vperm.xlu1 %1658, %v1124_v28   ;;  %v720_v51 = vunpack.c.2.s8 %v690_v43  ;;  %v722_v52 = vunpack.c.3.s8 %v690_v43 }
 0x131   : > { %v650_v9 = vpop.f32.mrf.mxu0  ;;  %v759_v34 = vpack.c.bf16 %v733_v33, %v731_v32  ;;  %v761_v47 = vpack.c.bf16 %v737_v46, %v735_v45  ;;  %1586 = vmatmul.msk.bf16.gmra.mxu3 %vm545_vm0, %v1617_v29  ;;  %v1129_v32 = vld [vmem:[%s1879_s8 + $0x78] sm:$0xff]  ;;  %v1686_v45 = vmov 0.0   ;;  %v716_v46 = vunpack.c.0.s8 %v690_v43 }
 0x132   : > { %v796_v25 = vpack.c.bf16 %v650_v9, %v648_v3  ;;  %v738_v3 = vcvt.s32.f32 %v706_v1  ;;  %v765_v9 = vpack.c.bf16 %v745_v8, %v743_v7  ;;  %385 = vst.msk [vmem:[#allocation2] sm:$0xff] %vm384_vm1, %v1686_v45  ;;  %v752_v55 = vcvt.s32.f32 %v720_v51  ;;  %v1133_v7 = vpop.permute.xlu0 %1132 }
 0x133   : > { %811 = vmatmul.bf16.vlgmr.msrb.gmra.mxu1 %v755_v6  ;;  %386 = vst.msk [vmem:[#allocation2 + $0x8] sm:$0xff] %vm384_vm1, %v1686_v45  ;;  %v748_v48 = vcvt.s32.f32 %v716_v46  ;;  %v754_v56 = vcvt.s32.f32 %v722_v52 }
 0x134   : > { %v762_v6 = vpack.c.bf16 %v738_v3, %v736_v2  ;;  %387 = vst.msk [vmem:[#allocation2 + $0x10] sm:$0xff] %vm384_vm1, %v1686_v45 }
 0x135   : > { %1177 = vperm.xlu0 %1657, %v1123_v14   ;;  %388 = vst.msk [vmem:[#allocation2 + $0x18] sm:$0xff] %vm384_vm1, %v1686_v45  ;;  %v770_v57 = vpack.c.bf16 %v754_v56, %v752_v55  ;;  %v1063_v4 = vpop.f32.mrf.mxu3 }
 0x136   : > { %389 = vst.msk [vmem:[#allocation2 + $0x20] sm:$0xff] %vm384_vm1, %v1686_v45 }
 0x137   : > { %390 = vst.msk [vmem:[#allocation2 + $0x28] sm:$0xff] %vm384_vm1, %v1686_v45 }
 0x138   : > { %1197 = vperm.xlu1 %1658, %v1127_v42   ;;  %391 = vst.msk [vmem:[#allocation2 + $0x30] sm:$0xff] %vm384_vm1, %v1686_v45 }
 0x139   : > { %v653_v12 = vpop.f32.mrf.mxu0  ;;  %392 = vst.msk [vmem:[#allocation2 + $0x38] sm:$0xff] %vm384_vm1, %v1686_v45  ;;  %v771_v63 = vld [vmem:[#allocation2] sm:$0xff] }
 0x13a   : > { %393 = vst.msk [vmem:[#allocation2 + $0x40] sm:$0xff] %vm384_vm1, %v1686_v45  ;;  %v772_v5 = vld [vmem:[#allocation2 + $0x8] sm:$0xff] }
 0x13b   : > { %394 = vst.msk [vmem:[#allocation2 + $0x48] sm:$0xff] %vm384_vm1, %v1686_v45  ;;  %v1143_v28 = vpop.permute.xlu1 %1142 }
 0x13c   : > { %395 = vst.msk [vmem:[#allocation2 + $0x50] sm:$0xff] %vm384_vm1, %v1686_v45  ;;  %v774_v29 = vld [vmem:[#allocation2 + $0x18] sm:$0xff] }
 0x13d   : > { %1192 = vperm.xlu0 %1657, %v1126_v27   ;;  %396 = vst.msk [vmem:[#allocation2 + $0x58] sm:$0xff] %vm384_vm1, %v1686_v45  ;;  %v1065_v14 = vpop.f32.mrf.mxu3  ;;  %v775_v41 = vld [vmem:[#allocation2 + $0x20] sm:$0xff] }
 0x13e   : > { %397 = vst.msk [vmem:[#allocation2 + $0x60] sm:$0xff] %vm384_vm1, %v1686_v45 }
 0x13f   : > { %398 = vst.msk [vmem:[#allocation2 + $0x68] sm:$0xff] %vm384_vm1, %v1686_v45 }
 0x140   : > { %399 = vst.msk [vmem:[#allocation2 + $0x70] sm:$0xff] %vm384_vm1, %v1686_v45 }
 0x141   : > { %v655_v20 = vpop.f32.mrf.mxu0  ;;  %400 = vst.msk [vmem:[#allocation2 + $0x78] sm:$0xff] %vm384_vm1, %v1686_v45 }
 0x142   : > { %v797_v21 = vpack.c.bf16 %v655_v20, %v653_v12  ;;  %v688_v12 = vld [vmem:[%s1848_s16 + $0x28] sm:$0xff] }
 0x143   : > { %816 = vmatmul.bf16.gmra.mxu1 %v757_v15  ;;  %v708_v15 = vunpack.c.0.s8 %v688_v12  ;;  %v710_v16 = vunpack.c.1.s8 %v688_v12 }
 0x144   : > { %857 = vmatpush.bf16.msra.mxu2 %v797_v21  ;;  %v715_v21 = vunpack.c.0.s8 %v689_v17 }
 0x145   : > { %v740_v19 = vcvt.s32.f32 %v708_v15  ;;  %v742_v20 = vcvt.s32.f32 %v710_v16  ;;  %1207 = vperm.xlu0 %1657, %v1129_v32   ;;  %v773_v16 = vld [vmem:[#allocation2 + $0x10] sm:$0xff] }
 0x146   : > { %v747_v24 = vcvt.s32.f32 %v715_v21 }
 0x147   : > { %v764_v23 = vpack.c.bf16 %v742_v20, %v740_v19 }
 0x148   : > { %858 = vmatpush.bf16.msra.mxu2 %v796_v25  ;;  %v749_v25 = vcvt.s32.f32 %v717_v22 }
 0x14a   : > { %v767_v26 = vpack.c.bf16 %v749_v25, %v747_v24 }
 0x14c   : > { %859 = vmatpush.bf16.msra.mxu2 %v795_v30  ;;  %v712_v30 = vunpack.c.2.s8 %v688_v12 }
 0x14e   : > { %v744_v33 = vcvt.s32.f32 %v712_v30 }
 0x14f   : > { %860 = vmatmul.bf16.vlgmr.msra.gmra.mxu2 %v756_v31  ;;  %v714_v31 = vunpack.c.3.s8 %v688_v12  ;;  %v1940_v12 = vld [vmem:[%s2025_s5] ss:$0 sm:$0xff] }
 0x153   : > { %821 = vmatmul.bf16.gmra.mxu1 %v759_v34  ;;  %v746_v34 = vcvt.s32.f32 %v714_v31 }
 0x155   : > { %v766_v37 = vpack.c.bf16 %v746_v34, %v744_v33 }
 0x15f   : > { %865 = vmatmul.bf16.gmra.mxu2 %v758_v44  ;;  %v1618_v44 = vld [vmem:[%s1865_s21 + $0x38] sm:$0xff] }
 0x160   : > { %1587 = vmatmul.msk.bf16.gmra.mxu3 %vm545_vm0, %v1618_v44 }
 0x163   : > { %826 = vmatmul.bf16.gmra.mxu1 %v761_v47  ;;  %v718_v47 = vunpack.c.1.s8 %v690_v43 }
 0x165   : > { %v750_v49 = vcvt.s32.f32 %v718_v47 }
 0x166   : > { %v1068_v31 = vpop.f32.mrf.mxu3 }
 0x167   : > { %v768_v50 = vpack.c.bf16 %v750_v49, %v748_v48 }
 0x16e   : > { %v1070_v46 = vpop.f32.mrf.mxu3 }
 0x16f   : > { %870 = vmatmul.bf16.gmra.mxu2 %v760_v58  ;;  %v1128_v58 = vld [vmem:[%s1879_s8 + $0x70] sm:$0xff] }
 0x170   : > { %1202 = vperm.xlu2 %1659, %v1128_v58  }
 0x173   : > { %831 = vmatmul.bf16.gmra.mxu1 %v763_v61 }
 0x175   : > { %v1148_v45 = vpop.permute.xlu1 %1147 }
 0x17f   : > { %875 = vmatmul.bf16.gmra.mxu2 %v762_v6 }
 0x183   : > { %836 = vmatmul.bf16.gmra.mxu1 %v765_v9 }
 0x18f   : > { %880 = vmatmul.bf16.gmra.mxu2 %v764_v23 }
 0x193   : > { %841 = vmatmul.bf16.gmra.mxu1 %v767_v26 }
 0x197   : > { %v1138_v20 = vpop.permute.xlu0 %1137 }
 0x19f   : > { %885 = vmatmul.bf16.gmra.mxu2 %v766_v37 }
 0x1a3   : > { %846 = vmatmul.bf16.gmra.mxu1 %v769_v40 }
 0x1af   : > { %890 = vmatmul.bf16.gmra.mxu2 %v768_v50 }
 0x1b0   : > { %v812_v54 = vpop.f32.mrf.mxu1 }
 0x1b8   : > { %v814_v59 = vpop.f32.mrf.mxu1 }
 0x1bf   : > { %895 = vmatmul.bf16.gmra.mxu2 %v770_v57 }
 0x1c0   : > { %v817_v61 = vpop.f32.mrf.mxu1 }
 0x1c8   : > { %v819_v1 = vpop.f32.mrf.mxu1 }
 0x1d0   : > { %v822_v9 = vpop.f32.mrf.mxu1 }
 0x1d2   : > { %v861_v0 = vpop.f32.mrf.mxu2 }
 0x1d3   : > { %v862_v2 = vadd.f32 %v861_v0, %v812_v54  ;;  %v776_v54 = vld [vmem:[#allocation2 + $0x28] sm:$0xff] }
 0x1d5   : > { %v901_v3 = vadd.f32 %v862_v2, %v771_v63  ;;  %v777_v2 = vld [vmem:[#allocation2 + $0x30] sm:$0xff] }
 0x1d7   : > { %918 = vst.msk [vmem:[#allocation2] sm:$0xff] %vm384_vm1, %v901_v3 }
 0x1d8   : > { %v824_v24 = vpop.f32.mrf.mxu1 }
 0x1da   : > { %v863_v6 = vpop.f32.mrf.mxu2 }
 0x1db   : > { %v864_v8 = vadd.f32 %v863_v6, %v814_v59  ;;  %v1158_v6 = vpop.permute.xlu2 %1157 }
 0x1dd   : > { %v902_v10 = vadd.f32 %v864_v8, %v772_v5 }
 0x1de   : > { %v1098_v11 = vld [vmem:[#allocation2] sm:$0xff] }
 0x1df   : > { %919 = vst.msk [vmem:[#allocation2 + $0x8] sm:$0xff] %vm384_vm1, %v902_v10  ;;  %v1210_v13 = vmul.f32 %v1133_v7, %v1098_v11 }
 0x1e0   : > { %v827_v39 = vpop.f32.mrf.mxu1 }
 0x1e1   : > { %v1226_v15 = vadd.f32 %v1210_v13, %v1058_v60 }
 0x1e2   : > { %v866_v17 = vpop.f32.mrf.mxu2 }
 0x1e3   : > { %v1246_v18 = vadd.f32 %v1940_v12, %v1226_v15  ;;  %v867_v19 = vadd.f32 %v866_v17, %v817_v61 }
 0x1e5   : > { %v1262_v21 = vmax.f32 %v1246_v18, 0.0  ;;  %v903_v22 = vadd.f32 %v867_v19, %v773_v16  ;;  %v778_v16 = vld [vmem:[#allocation2 + $0x38] sm:$0xff] }
 0x1e6   : > { %v1099_v23 = vld [vmem:[#allocation2 + $0x8] sm:$0xff] }
 0x1e7   : > { %v1278_v25 = vpack.c.bf16 %v1262_v21, %v1262_v21  ;;  %920 = vst.msk [vmem:[#allocation2 + $0x10] sm:$0xff] %vm384_vm1, %v903_v22  ;;  %v1211_v26 = vmul.f32 %v1138_v20, %v1099_v23  ;;  %v1163_v20 = vpop.permute.xlu0 %1162 }
 0x1e8   : > { %v829_v56 = vpop.f32.mrf.mxu1 }
 0x1e9   : > { %1295 = vst.msk [vmem:[%s1948_s14] sm:$0xf] %vm1294_vm2, %v1278_v25  ;;  %v1227_v27 = vadd.f32 %v1211_v26, %v1060_v62  ;;  %v1073_v62 = vpop.f32.mrf.mxu3 }
 0x1ea   : > { %v868_v30 = vpop.f32.mrf.mxu2 }
 0x1eb   : > { %v1247_v32 = vadd.f32 %v1940_v12, %v1227_v27  ;;  %v869_v33 = vadd.f32 %v868_v30, %v819_v1 }
 0x1ed   : > { %v1263_v34 = vmax.f32 %v1247_v32, 0.0  ;;  %v904_v35 = vadd.f32 %v869_v33, %v774_v29  ;;  %v1168_v33 = vpop.permute.xlu1 %1167 }
 0x1ee   : > { %v1100_v36 = vld [vmem:[#allocation2 + $0x10] sm:$0xff] }
 0x1ef   : > { %v1279_v37 = vpack.c.bf16 %v1263_v34, %v1263_v34  ;;  %921 = vst.msk [vmem:[#allocation2 + $0x18] sm:$0xff] %vm384_vm1, %v904_v35  ;;  %v1212_v38 = vmul.f32 %v1143_v28, %v1100_v36  ;;  %v779_v28 = vld [vmem:[#allocation2 + $0x40] sm:$0xff] }
 0x1f0   : > { %v832_v7 = vpop.f32.mrf.mxu1 }
 0x1f1   : > { %1296 = vst.msk [vmem:[%s1948_s14 + $0x4] sm:$0xf] %vm1294_vm2, %v1279_v37  ;;  %v1228_v40 = vadd.f32 %v1212_v38, %v1063_v4 }
 0x1f2   : > { %v871_v42 = vpop.f32.mrf.mxu2 }
 0x1f3   : > { %v1248_v43 = vadd.f32 %v1940_v12, %v1228_v40  ;;  %v872_v44 = vadd.f32 %v871_v42, %v822_v9 }
 0x1f5   : > { %v1264_v47 = vmax.f32 %v1248_v43, 0.0  ;;  %v905_v48 = vadd.f32 %v872_v44, %v775_v41  ;;  %v780_v41 = vld [vmem:[#allocation2 + $0x48] sm:$0xff] }
 0x1f6   : > { %v1101_v49 = vld [vmem:[#allocation2 + $0x18] sm:$0xff] }
 0x1f7   : > { %v1280_v50 = vpack.c.bf16 %v1264_v47, %v1264_v47  ;;  %922 = vst.msk [vmem:[#allocation2 + $0x20] sm:$0xff] %vm384_vm1, %v905_v48  ;;  %v1213_v51 = vmul.f32 %v1148_v45, %v1101_v49  ;;  %v1173_v45 = vpop.permute.xlu2 %1172 }
 0x1f9   : > { %1297 = vst.msk [vmem:[%s1948_s14 + $0x8] sm:$0xf] %vm1294_vm2, %v1280_v50  ;;  %v1229_v52 = vadd.f32 %v1213_v51, %v1065_v14  ;;  %v1075_v14 = vpop.f32.mrf.mxu3 }
 0x1fa   : > { %v873_v55 = vpop.f32.mrf.mxu2 }
 0x1fb   : > { %v1249_v57 = vadd.f32 %v1940_v12, %v1229_v52  ;;  %v874_v58 = vadd.f32 %v873_v55, %v824_v24  ;;  %v834_v24 = vpop.f32.mrf.mxu1 }
 0x1fd   : > { %v1265_v59 = vmax.f32 %v1249_v57, 0.0  ;;  %v906_v60 = vadd.f32 %v874_v58, %v776_v54  ;;  %v781_v54 = vld [vmem:[#allocation2 + $0x50] sm:$0xff] }
 0x1fe   : > { %v1102_v61 = vld [vmem:[#allocation2 + $0x20] sm:$0xff] }
 0x1ff   : > { %v1281_v63 = vpack.c.bf16 %v1265_v59, %v1265_v59  ;;  %923 = vst.msk [vmem:[#allocation2 + $0x28] sm:$0xff] %vm384_vm1, %v906_v60  ;;  %v1214_v0 = vmul.f32 %v1153_v53, %v1102_v61  ;;  %v1178_v60 = vpop.permute.xlu0 %1177 }
 0x201   : > { %1298 = vst.msk [vmem:[%s1948_s14 + $0xc] sm:$0xf] %vm1294_vm2, %v1281_v63  ;;  %v1230_v1 = vadd.f32 %v1214_v0, %v1068_v31  ;;  %v1078_v30 = vpop.f32.mrf.mxu3 }
 0x202   : > { %v876_v3 = vpop.f32.mrf.mxu2 }
 0x203   : > { %v1250_v4 = vadd.f32 %v1940_v12, %v1230_v1  ;;  %v877_v5 = vadd.f32 %v876_v3, %v827_v39  ;;  %v837_v39 = vpop.f32.mrf.mxu1 }
 0x205   : > { %v1266_v8 = vmax.f32 %v1250_v4, 0.0  ;;  %v907_v9 = vadd.f32 %v877_v5, %v777_v2  ;;  %v782_v2 = vld [vmem:[#allocation2 + $0x58] sm:$0xff] }
 0x206   : > { %v1103_v10 = vld [vmem:[#allocation2 + $0x28] sm:$0xff] }
 0x207   : > { %v1282_v11 = vpack.c.bf16 %v1266_v8, %v1266_v8  ;;  %924 = vst.msk [vmem:[#allocation2 + $0x30] sm:$0xff] %vm384_vm1, %v907_v9  ;;  %v1215_v13 = vmul.f32 %v1158_v6, %v1103_v10 }
 0x209   : > { %1299 = vst.msk [vmem:[%s1948_s14 + $0x10] sm:$0xf] %vm1294_vm2, %v1282_v11  ;;  %v1231_v15 = vadd.f32 %v1215_v13, %v1070_v46  ;;  %v1080_v46 = vpop.f32.mrf.mxu3 }
 0x20a   : > { %v878_v17 = vpop.f32.mrf.mxu2 }
 0x20b   : > { %v1251_v18 = vadd.f32 %v1940_v12, %v1231_v15  ;;  %v879_v19 = vadd.f32 %v878_v17, %v829_v56  ;;  %v839_v53 = vpop.f32.mrf.mxu1 }
 0x20d   : > { %v1267_v21 = vmax.f32 %v1251_v18, 0.0  ;;  %v908_v22 = vadd.f32 %v879_v19, %v778_v16  ;;  %v783_v16 = vld [vmem:[#allocation2 + $0x60] sm:$0xff] }
 0x20e   : > { %v1104_v23 = vld [vmem:[#allocation2 + $0x30] sm:$0xff] }
 0x20f   : > { %v1283_v25 = vpack.c.bf16 %v1267_v21, %v1267_v21  ;;  %925 = vst.msk [vmem:[#allocation2 + $0x38] sm:$0xff] %vm384_vm1, %v908_v22  ;;  %v1216_v26 = vmul.f32 %v1163_v20, %v1104_v23  ;;  %v1188_v22 = vpop.permute.xlu2 %1187 }
 0x211   : > { %1300 = vst.msk [vmem:[%s1948_s14 + $0x14] sm:$0xf] %vm1294_vm2, %v1283_v25  ;;  %v1232_v27 = vadd.f32 %v1216_v26, %v1073_v62  ;;  %v1083_v62 = vpop.f32.mrf.mxu3 }
 0x212   : > { %v881_v29 = vpop.f32.mrf.mxu2 }
 0x213   : > { %v1252_v31 = vadd.f32 %v1940_v12, %v1232_v27  ;;  %v882_v32 = vadd.f32 %v881_v29, %v832_v7  ;;  %v842_v6 = vpop.f32.mrf.mxu1  ;;  %v1183_v7 = vpop.permute.xlu1 %1182  ;;  %v784_v29 = vld [vmem:[#allocation2 + $0x68] sm:$0xff] }
 0x215   : > { %v1268_v34 = vmax.f32 %v1252_v31, 0.0  ;;  %v909_v35 = vadd.f32 %v882_v32, %v779_v28 }
 0x216   : > { %v1105_v36 = vld [vmem:[#allocation2 + $0x38] sm:$0xff] }
 0x217   : > { %v1284_v37 = vpack.c.bf16 %v1268_v34, %v1268_v34  ;;  %926 = vst.msk [vmem:[#allocation2 + $0x40] sm:$0xff] %vm384_vm1, %v909_v35  ;;  %v1217_v38 = vmul.f32 %v1168_v33, %v1105_v36  ;;  %v1193_v35 = vpop.permute.xlu0 %1192 }
 0x219   : > { %1301 = vst.msk [vmem:[%s1948_s14 + $0x18] sm:$0xf] %vm1294_vm2, %v1284_v37  ;;  %v1233_v40 = vadd.f32 %v1217_v38, %v1075_v14  ;;  %v1085_v14 = vpop.f32.mrf.mxu3 }
 0x21a   : > { %v883_v42 = vpop.f32.mrf.mxu2 }
 0x21b   : > { %v1253_v43 = vadd.f32 %v1940_v12, %v1233_v40  ;;  %v884_v44 = vadd.f32 %v883_v42, %v834_v24  ;;  %v844_v24 = vpop.f32.mrf.mxu1 }
 0x21d   : > { %v1269_v47 = vmax.f32 %v1253_v43, 0.0  ;;  %v910_v48 = vadd.f32 %v884_v44, %v780_v41  ;;  %v785_v41 = vld [vmem:[#allocation2 + $0x70] sm:$0xff] }
 0x21e   : > { %v1106_v49 = vld [vmem:[#allocation2 + $0x40] sm:$0xff] }
 0x21f   : > { %v1285_v50 = vpack.c.bf16 %v1269_v47, %v1269_v47  ;;  %927 = vst.msk [vmem:[#allocation2 + $0x48] sm:$0xff] %vm384_vm1, %v910_v48  ;;  %v1218_v51 = vmul.f32 %v1173_v45, %v1106_v49  ;;  %v1198_v48 = vpop.permute.xlu1 %1197 }
 0x221   : > { %1302 = vst.msk [vmem:[%s1948_s14 + $0x1c] sm:$0xf] %vm1294_vm2, %v1285_v50  ;;  %v1234_v52 = vadd.f32 %v1218_v51, %v1078_v30  ;;  %v1088_v28 = vpop.f32.mrf.mxu3 }
 0x222   : > { %v886_v55 = vpop.f32.mrf.mxu2 }
 0x223   : > { %v1254_v56 = vadd.f32 %v1940_v12, %v1234_v52  ;;  %v887_v57 = vadd.f32 %v886_v55, %v837_v39  ;;  %v847_v39 = vpop.f32.mrf.mxu1 }
 0x225   : > { %v1270_v58 = vmax.f32 %v1254_v56, 0.0  ;;  %v911_v59 = vadd.f32 %v887_v57, %v781_v54  ;;  %v786_v54 = vld [vmem:[#allocation2 + $0x78] sm:$0xff] }
 0x226   : > { %v1107_v61 = vld [vmem:[#allocation2 + $0x48] sm:$0xff] }
 0x227   : > { %v1286_v63 = vpack.c.bf16 %v1270_v58, %v1270_v58  ;;  %v1219_v0 = vmul.f32 %v1178_v60, %v1107_v61  ;;  %928 = vst.msk [vmem:[#allocation2 + $0x50] sm:$0xff] %vm384_vm1, %v911_v59  ;;  %v1203_v60 = vpop.permute.xlu2 %1202 }
 0x229   : > { %1303 = vst.msk [vmem:[%s1948_s14 + $0x20] sm:$0xf] %vm1294_vm2, %v1286_v63  ;;  %v1235_v1 = vadd.f32 %v1219_v0, %v1080_v46  ;;  %v1090_v45 = vpop.f32.mrf.mxu3 }
 0x22a   : > { %v888_v3 = vpop.f32.mrf.mxu2 }
 0x22b   : > { %v1255_v4 = vadd.f32 %v1940_v12, %v1235_v1  ;;  %v889_v5 = vadd.f32 %v888_v3, %v839_v53  ;;  %v849_v53 = vpop.f32.mrf.mxu1 }
 0x22d   : > { %v1271_v8 = vmax.f32 %v1255_v4, 0.0  ;;  %v912_v9 = vadd.f32 %v889_v5, %v782_v2  ;;  %v1208_v4 = vpop.permute.xlu0 %1207 }
 0x22e   : > { %v1108_v10 = vld [vmem:[#allocation2 + $0x50] sm:$0xff] }
 0x22f   : > { %v1287_v11 = vpack.c.bf16 %v1271_v8, %v1271_v8  ;;  %929 = vst.msk [vmem:[#allocation2 + $0x58] sm:$0xff] %vm384_vm1, %v912_v9  ;;  %v1220_v13 = vmul.f32 %v1183_v7, %v1108_v10 }
 0x231   : > { %1304 = vst.msk [vmem:[%s1948_s14 + $0x24] sm:$0xf] %vm1294_vm2, %v1287_v11  ;;  %v1236_v15 = vadd.f32 %v1220_v13, %v1083_v62  ;;  %v1093_v61 = vpop.f32.mrf.mxu3 }
 0x232   : > { %v891_v17 = vpop.f32.mrf.mxu2 }
 0x233   : > { %v1256_v18 = vadd.f32 %v1940_v12, %v1236_v15  ;;  %v892_v19 = vadd.f32 %v891_v17, %v842_v6 }
 0x235   : > { %v1272_v20 = vmax.f32 %v1256_v18, 0.0  ;;  %v913_v21 = vadd.f32 %v892_v19, %v783_v16 }
 0x236   : > { %v1109_v23 = vld [vmem:[#allocation2 + $0x58] sm:$0xff] }
 0x237   : > { %v1221_v25 = vmul.f32 %v1188_v22, %v1109_v23  ;;  %v1288_v26 = vpack.c.bf16 %v1272_v20, %v1272_v20  ;;  %930 = vst.msk [vmem:[#allocation2 + $0x60] sm:$0xff] %vm384_vm1, %v913_v21 }
 0x239   : > { %1305 = vst.msk [vmem:[%s1948_s14 + $0x28] sm:$0xf] %vm1294_vm2, %v1288_v26  ;;  %v1237_v27 = vadd.f32 %v1221_v25, %v1085_v14  ;;  %v1095_v8 = vpop.f32.mrf.mxu3 }
 0x23a   : > { %v893_v30 = vpop.f32.mrf.mxu2 }
 0x23b   : > { %v1257_v31 = vadd.f32 %v1940_v12, %v1237_v27  ;;  %v894_v32 = vadd.f32 %v893_v30, %v844_v24 }
 0x23d   : > { %v1273_v33 = vmax.f32 %v1257_v31, 0.0  ;;  %v914_v34 = vadd.f32 %v894_v32, %v784_v29 }
 0x23e   : > { %v1110_v36 = vld [vmem:[#allocation2 + $0x60] sm:$0xff] }
 0x23f   : > { %v1289_v37 = vpack.c.bf16 %v1273_v33, %v1273_v33  ;;  %v1222_v38 = vmul.f32 %v1193_v35, %v1110_v36  ;;  %931 = vst.msk [vmem:[#allocation2 + $0x68] sm:$0xff] %vm384_vm1, %v914_v34 }
 0x241   : > { %1306 = vst.msk [vmem:[%s1948_s14 + $0x2c] sm:$0xf] %vm1294_vm2, %v1289_v37  ;;  %v1238_v40 = vadd.f32 %v1222_v38, %v1088_v28 }
 0x242   : > { %v896_v42 = vpop.f32.mrf.mxu2 }
 0x243   : > { %v1258_v43 = vadd.f32 %v1940_v12, %v1238_v40  ;;  %v897_v44 = vadd.f32 %v896_v42, %v847_v39 }
 0x245   : > { %v1274_v46 = vmax.f32 %v1258_v43, 0.0  ;;  %v915_v47 = vadd.f32 %v897_v44, %v785_v41 }
 0x246   : > { %v1111_v49 = vld [vmem:[#allocation2 + $0x68] sm:$0xff] }
 0x247   : > { %v1290_v50 = vpack.c.bf16 %v1274_v46, %v1274_v46  ;;  %v1223_v51 = vmul.f32 %v1198_v48, %v1111_v49  ;;  %932 = vst.msk [vmem:[#allocation2 + $0x70] sm:$0xff] %vm384_vm1, %v915_v47 }
 0x249   : > { %1307 = vst.msk [vmem:[%s1948_s14 + $0x30] sm:$0xf] %vm1294_vm2, %v1290_v50  ;;  %v1239_v52 = vadd.f32 %v1223_v51, %v1090_v45 }
 0x24a   : > { %v898_v55 = vpop.f32.mrf.mxu2 }
 0x24b   : > { %v1259_v56 = vadd.f32 %v1940_v12, %v1239_v52  ;;  %v899_v57 = vadd.f32 %v898_v55, %v849_v53 }
 0x24d   : > { %v1275_v58 = vmax.f32 %v1259_v56, 0.0  ;;  %v916_v59 = vadd.f32 %v899_v57, %v786_v54 }
 0x24e   : > { %v1112_v62 = vld [vmem:[#allocation2 + $0x70] sm:$0xff] }
 0x24f   : > { %v1291_v63 = vpack.c.bf16 %v1275_v58, %v1275_v58  ;;  %v1224_v0 = vmul.f32 %v1203_v60, %v1112_v62  ;;  %933 = vst.msk [vmem:[#allocation2 + $0x78] sm:$0xff] %vm384_vm1, %v916_v59 }
 0x251   : > { %1308 = vst.msk [vmem:[%s1948_s14 + $0x34] sm:$0xf] %vm1294_vm2, %v1291_v63  ;;  %v1240_v1 = vadd.f32 %v1224_v0, %v1093_v61 }
 0x253   : > { %v1260_v2 = vadd.f32 %v1940_v12, %v1240_v1 }
 0x255   : > { %v1276_v3 = vmax.f32 %v1260_v2, 0.0 }
 0x256   : > { %v1113_v5 = vld [vmem:[#allocation2 + $0x78] sm:$0xff] }
 0x257   : > { %v1292_v6 = vpack.c.bf16 %v1276_v3, %v1276_v3  ;;  %v1225_v7 = vmul.f32 %v1208_v4, %v1113_v5 }
 0x259   : > { %1309 = vst.msk [vmem:[%s1948_s14 + $0x38] sm:$0xf] %vm1294_vm2, %v1292_v6  ;;  %v1241_v9 = vadd.f32 %v1225_v7, %v1095_v8 }
 0x25b   : > { %v1261_v10 = vadd.f32 %v1940_v12, %v1241_v9 }
 0x25d   : > { %v1277_v11 = vmax.f32 %v1261_v10, 0.0 }
 0x25f   : > { %v1293_v13 = vpack.c.bf16 %v1277_v11, %v1277_v11 }
 0x261   : > { %1310 = vst.msk [vmem:[%s1948_s14 + $0x3c] sm:$0xf] %vm1294_vm2, %v1293_v13 }
 0x262 PF: > { %s17_s26 = sadd.s32 1, %s1683_s26   ;;  %s2028_s24 = smov %s1679_s25 }
 0x263   : > { %p14_p6 = scmp.ge.s32.totalorder %s17_s26, 4   ;;  %s2029_s25 = smov %s2031_s27 }
 0x265   :  { %16 = sbr.rel (!%p14_p6) target bundleno = 2 (0x2), region = 95 }

</bundles_post_ra>
